<compile_context>
chip_gen: v7x
topology: tpu7x:2x2x1
jax: 0.10.0
libtpu: 0.0.40
codegen_flags: <defaults>
</compile_context>

<pallas_src>
import functools

import numpy as np
import jax
import jax.numpy as jnp
from jax.experimental import pallas as pl
from jax.experimental.pallas import tpu as pltpu

NODES = 6  # group size is hard-coded in the reference module (i*6:(i+1)*6)


def _gat_kernel(h_ref, adj_ref, wext_ref, o_ref, *, alpha, concat,
                n_groups, batch, n_graphs, out_features):
    G, B, N, OF = n_groups, batch, n_graphs, out_features
    RG = N * NODES                 # rows per (group, batch) slab
    R = G * B * RG                 # total rows
    n_blocks = R // NODES          # number of 6x6 attention blocks

    adj = adj_ref[...]             # (G, 6, 6)

    # (1) Single MXU pass: node projection + folded attention projections.
    #     Rows are ordered (g, b, n, node); columns [0, OF) are Wh, column
    #     OF+g is a1[g].Wh, column OF+G+g is a2[g].Wh.
    WhX = jnp.dot(h_ref[...], wext_ref[...],
                  preferred_element_type=jnp.float32)            # (R, OF+2G)

    # (2) Attention per group.  Like the reference (e[i] / adj[i]), the logits
    #     for group g come from batch element g only (quirk of the module).
    att_rows = []                                                # (RG, 6) blocks
    for g in range(G):
        base = (g * B + g) * RG                                  # batch g, group g
        blk = WhX[base:base + RG, :]                             # (RG, OFX) contiguous
        blk3 = jnp.stack(
            [blk[n * NODES:(n + 1) * NODES, :] for n in range(N)],
            axis=0)                                              # (N, 6, OFX)
        s1 = blk3[:, :, OF + g]                                  # (N, 6)
        s2 = blk3[:, :, OF + G + g]                               # (N, 6)
        e = s1[:, :, None] + s2[:, None, :]                      # (N, 6, 6)
        e = jnp.where(e > 0, e, alpha * e)                       # LeakyReLU(alpha)
        logits = jnp.where(adj[g][None, :, :] > 0, e, -9e15)     # adjacency mask
        logits = logits - jnp.max(logits, axis=-1, keepdims=True)
        p = jnp.exp(logits)
        att = p / jnp.sum(p, axis=-1, keepdims=True)             # softmax(dim=-1)
        # TODO(synk): F.dropout on the attention weights is identity here (eval
        # mode); training-mode dropout would need pltpu.prng_* and could not
        # match torch's RNG stream anyway.
        att_flat = jnp.concatenate([att[n] for n in range(N)], axis=0)  # (RG, 6)
        att_rows.extend([att_flat] * B)        # attention is shared across batch
    att_all = jnp.concatenate(att_rows, axis=0)                  # (R, 6)

    # (3) Block-diagonal (R, R) attention matrix: column block i holds rows
    #     [6i, 6i+6) of att_all and zeros elsewhere -> the whole aggregation
    #     (all groups, batches, graphs) is ONE matmul.
    row_id = jax.lax.broadcasted_iota(jnp.int32, (R, NODES), 0)  # (R, 6)
    pieces = []
    for blk_idx in range(n_blocks):
        in_blk = (row_id >= blk_idx * NODES) & (row_id < (blk_idx + 1) * NODES)
        pieces.append(jnp.where(in_blk, att_all, 0.0))
    A = jnp.concatenate(pieces, axis=1)                          # (R, R)

    hp = jnp.dot(A, WhX[:, :OF], preferred_element_type=jnp.float32)  # (R, OF)

    if concat:
        # ELU; clamp the exp argument so the untaken branch cannot overflow.
        hp = jnp.where(hp > 0, hp, jnp.exp(jnp.minimum(hp, 0.0)) - 1.0)
    o_ref[...] = hp.astype(o_ref.dtype)


def multi_graph_attention_layer(h, adj, W, a, *, alpha, concat=True):
    B, N, H2, Fin = h.shape
    OF = W.shape[1]
    G = H2 // NODES
    assert H2 == G * NODES and G >= 1
    assert a.shape == (2, 2 * OF, 1) and G <= 2 and B >= G

    a1 = a[:G, :OF, 0]                                   # (G, OF) -> "source" node
    a2 = a[:G, OF:, 0]                                   # (G, OF) -> "target" node
    # Fold the attention vectors into extra columns of W so the kernel gets
    # Wh, s1 and s2 out of a single MXU pass.
    w_ext = jnp.concatenate([W, W @ a1.T, W @ a2.T], axis=1).astype(jnp.float32)
    OFX = OF + 2 * G

    # Wrapper-side layout plumbing: rows ordered (group, batch, graph, node) so
    # every in-kernel slice is a contiguous, 8-aligned row range of a 2D slab.
    h_r = h.reshape(B, N, G, NODES, Fin).transpose(2, 0, 1, 3, 4)
    R = G * B * N * NODES
    h2d = h_r.reshape(R, Fin).astype(jnp.float32)

    kernel = functools.partial(_gat_kernel, alpha=float(alpha),
                               concat=bool(concat), n_groups=G, batch=B,
                               n_graphs=N, out_features=OF)
    # Whole problem runs in a single program; all operands fit trivially in VMEM.
    # TODO(synk): for large N, tile graphs per step (split the row axis) and
    # mark that axis "parallel"; size the tile against the generation's VMEM.
    out2d = pl.pallas_call(
        kernel,
        out_shape=jax.ShapeDtypeStruct((R, OF), jnp.float32),
        grid_spec=pltpu.PrefetchScalarGridSpec(
            num_scalar_prefetch=0,
            grid=(1,),
            in_specs=[
                pl.BlockSpec((R, Fin), lambda i: (0, 0)),
                pl.BlockSpec((G, NODES, NODES), lambda i: (0, 0, 0)),
                pl.BlockSpec((Fin, OFX), lambda i: (0, 0)),
            ],
            out_specs=pl.BlockSpec((R, OF), lambda i: (0, 0)),
        ),
        compiler_params=pltpu.CompilerParams(
            dimension_semantics=("arbitrary",)),
    )(h2d, adj.astype(jnp.float32), w_ext)

    # Rows are ordered (g, b, n, node); restore the (B, N, H2, OF) layout.
    out = out2d.reshape(G, B, N, NODES, OF).transpose(1, 2, 0, 3, 4)
    return out.reshape(B, N, H2, OF)


def _reference(h, adj, W, a, *, alpha, concat=True):
    """Pure-JAX mirror of the PyTorch forward (eval mode)."""
    Wh = jnp.einsum('bnhf,fo->bnho', h, W)
    OF = W.shape[1]
    G = h.shape[2] // NODES
    outs = []
    for i in range(G):
        Wh_i = Wh[:, :, i * NODES:(i + 1) * NODES, :]              # (B, N, 6, OF)
        a1 = a[i, :OF, 0]
        a2 = a[i, OF:, 0]
        s1 = jnp.einsum('bnjf,f->bnj', Wh_i, a1)
        s2 = jnp.einsum('bnjf,f->bnj', Wh_i, a2)
        e = s1[..., :, None] + s2[..., None, :]                    # (B, N, 6, 6)
        e = jnp.where(e > 0, e, alpha * e)
        att = jnp.where(adj[i][None, :, :] > 0, e[i], -9e15)       # (N, 6, 6)
        att = jax.nn.softmax(att, axis=-1)
        hp = jnp.einsum('njk,bnkf->bnjf', att, Wh_i)
        outs.append(hp)
    out = jnp.concatenate(outs, axis=2)
    if concat:
        out = jnp.where(out > 0, out, jnp.exp(jnp.minimum(out, 0.0)) - 1.0)
    return out


def _xavier_uniform(key, shape, gain):
    if len(shape) == 2:
        fan_in, fan_out = shape[0], shape[1]
    else:
        rf = int(np.prod(shape[2:]))
        fan_in, fan_out = shape[1] * rf, shape[0] * rf
    bound = gain * float(np.sqrt(6.0 / (fan_in + fan_out)))
    return jax.random.uniform(key, shape, jnp.float32, -bound, bound)


if __name__ == "__main__":
    B, N, H2, FIN, OF = 2, 4, 12, 8, 8        # H2 = 12 -> 2 groups of 6 nodes
    ALPHA = 0.2

    key = jax.random.PRNGKey(0)
    k_h, k_adj, k_w, k_a = jax.random.split(key, 4)
    h = jax.random.normal(k_h, (B, N, H2, FIN), dtype=jnp.float32)
    adj = (jax.random.uniform(k_adj, (H2 // NODES, NODES, NODES)) > 0.4
           ).astype(jnp.float32)
    W = _xavier_uniform(k_w, (FIN, OF), gain=1.414)
    a = _xavier_uniform(k_a, (2, 2 * OF, 1), gain=1.414)

    out = multi_graph_attention_layer(h, adj, W, a, alpha=ALPHA, concat=True)
    out = jax.block_until_ready(out)

    ref = _reference(h, adj, W, a, alpha=ALPHA, concat=True)
    np.testing.assert_allclose(np.asarray(out), np.asarray(ref),
                               rtol=2e-4, atol=2e-4)
    print("KERNEL_OK")
</pallas_src>

<mosaic_0001>
module attributes {stable_mosaic.version = 11 : i64} {
  func.func @_gat_kernel(%arg0: i32, %arg1: memref<96x8xf32, #tpu.memory_space<vmem>>, %arg2: memref<2x6x6xf32, #tpu.memory_space<vmem>>, %arg3: memref<8x12xf32, #tpu.memory_space<vmem>>, %arg4: memref<96x8xf32, #tpu.memory_space<vmem>>) attributes {dimension_semantics = [#tpu.dimension_semantics<arbitrary>], iteration_bounds = array<i64: 1>, scalar_prefetch = 0 : i64, scratch_operands = 0 : i64, tpu.core_type = #tpu.core_type<tc>, window_params = [{pipeline_mode = #tpu.pipeline_mode<synchronous>, transform_indices = @transform_0, window_bounds = array<i64: 96, 8>}, {pipeline_mode = #tpu.pipeline_mode<synchronous>, transform_indices = @transform_1, window_bounds = array<i64: 2, 6, 6>}, {pipeline_mode = #tpu.pipeline_mode<synchronous>, transform_indices = @transform_2, window_bounds = array<i64: 8, 12>}, {pipeline_mode = #tpu.pipeline_mode<synchronous>, transform_indices = @transform_3, window_bounds = array<i64: 96, 8>}]} {
    %c0 = arith.constant 0 : index
    %c0_0 = arith.constant 0 : index
    %c0_1 = arith.constant 0 : index
    %0 = vector.load %arg2[%c0, %c0_0, %c0_1] : memref<2x6x6xf32, #tpu.memory_space<vmem>>, vector<2x6x6xf32>
    %c0_2 = arith.constant 0 : index
    %c0_3 = arith.constant 0 : index
    %1 = vector.load %arg1[%c0_2, %c0_3] : memref<96x8xf32, #tpu.memory_space<vmem>>, vector<96x8xf32>
    %c0_4 = arith.constant 0 : index
    %c0_5 = arith.constant 0 : index
    %2 = vector.load %arg3[%c0_4, %c0_5] : memref<8x12xf32, #tpu.memory_space<vmem>>, vector<8x12xf32>
    %cst = arith.constant dense<0.000000e+00> : vector<96x12xf32>
    %3 = tpu.matmul %1, %2, %cst {dimension_numbers = #tpu.dot_dimension_numbers<[1], [0], [0], [1], [0, 0, 1, 1], [], []>} : vector<96x8xf32>, vector<8x12xf32>, vector<96x12xf32> -> vector<96x12xf32>
    %4 = vector.extract_strided_slice %3 {offsets = [0, 0], sizes = [24, 12], strides = [1, 1]} : vector<96x12xf32> to vector<24x12xf32>
    %5 = vector.extract_strided_slice %4 {offsets = [0, 0], sizes = [6, 12], strides = [1, 1]} : vector<24x12xf32> to vector<6x12xf32>
    %6 = vector.extract_strided_slice %4 {offsets = [6, 0], sizes = [6, 12], strides = [1, 1]} : vector<24x12xf32> to vector<6x12xf32>
    %7 = vector.extract_strided_slice %4 {offsets = [12, 0], sizes = [6, 12], strides = [1, 1]} : vector<24x12xf32> to vector<6x12xf32>
    %8 = vector.extract_strided_slice %4 {offsets = [18, 0], sizes = [6, 12], strides = [1, 1]} : vector<24x12xf32> to vector<6x12xf32>
    %9 = vector.shape_cast %5 : vector<6x12xf32> to vector<1x6x12xf32>
    %10 = vector.shape_cast %6 : vector<6x12xf32> to vector<1x6x12xf32>
    %11 = vector.shape_cast %7 : vector<6x12xf32> to vector<1x6x12xf32>
    %12 = vector.shape_cast %8 : vector<6x12xf32> to vector<1x6x12xf32>
    %13 = tpu.concatenate %9, %10, %11, %12 in 0 : vector<1x6x12xf32>, vector<1x6x12xf32>, vector<1x6x12xf32>, vector<1x6x12xf32> -> vector<4x6x12xf32>
    %14 = vector.extract_strided_slice %13 {offsets = [0, 0, 8], sizes = [4, 6, 1], strides = [1, 1, 1]} : vector<4x6x12xf32> to vector<4x6x1xf32>
    %15 = vector.shape_cast %14 : vector<4x6x1xf32> to vector<4x6xf32>
    %16 = vector.extract_strided_slice %13 {offsets = [0, 0, 10], sizes = [4, 6, 1], strides = [1, 1, 1]} : vector<4x6x12xf32> to vector<4x6x1xf32>
    %17 = vector.shape_cast %16 : vector<4x6x1xf32> to vector<4x6xf32>
    %18 = vector.shape_cast %15 : vector<4x6xf32> to vector<4x6x1xf32>
    %19 = vector.shape_cast %17 : vector<4x6xf32> to vector<4x1x6xf32>
    %20 = vector.broadcast %18 : vector<4x6x1xf32> to vector<4x6x6xf32>
    %21 = vector.broadcast %19 : vector<4x1x6xf32> to vector<4x6x6xf32>
    %22 = arith.addf %20, %21 : vector<4x6x6xf32>
    %cst_6 = arith.constant 0.000000e+00 : f32
    %23 = vector.broadcast %cst_6 : f32 to vector<4x6x6xf32>
    %24 = arith.cmpf ogt, %22, %23 : vector<4x6x6xf32>
    %cst_7 = arith.constant 2.000000e-01 : f32
    %25 = vector.broadcast %cst_7 : f32 to vector<4x6x6xf32>
    %26 = arith.mulf %25, %22 : vector<4x6x6xf32>
    %27 = arith.select %24, %22, %26 : vector<4x6x6xi1>, vector<4x6x6xf32>
    %28 = vector.extract_strided_slice %0 {offsets = [0, 0, 0], sizes = [1, 6, 6], strides = [1, 1, 1]} : vector<2x6x6xf32> to vector<1x6x6xf32>
    %29 = vector.shape_cast %28 : vector<1x6x6xf32> to vector<6x6xf32>
    %30 = vector.shape_cast %29 : vector<6x6xf32> to vector<1x6x6xf32>
    %cst_8 = arith.constant 0.000000e+00 : f32
    %31 = vector.broadcast %cst_8 : f32 to vector<1x6x6xf32>
    %32 = arith.cmpf ogt, %30, %31 : vector<1x6x6xf32>
    %cst_9 = arith.constant -9.000000e+15 : f32
    %33 = vector.shape_cast %32 : vector<1x6x6xi1> to vector<1x6x6xi1>
    %34 = vector.broadcast %33 : vector<1x6x6xi1> to vector<4x6x6xi1>
    %35 = vector.broadcast %cst_9 : f32 to vector<4x6x6xf32>
    %36 = arith.select %34, %27, %35 : vector<4x6x6xi1>, vector<4x6x6xf32>
    %cst_10 = arith.constant dense<0xFF800000> : vector<4x6xf32>
    %37 = vector.multi_reduction <maximumf>, %36, %cst_10 [2] : vector<4x6x6xf32> to vector<4x6xf32>
    %38 = vector.shape_cast %37 : vector<4x6xf32> to vector<4x6x1xf32>
    %39 = vector.broadcast %38 : vector<4x6x1xf32> to vector<4x6x6xf32>
    %40 = arith.subf %36, %39 : vector<4x6x6xf32>
    %41 = math.exp %40 : vector<4x6x6xf32>
    %cst_11 = arith.constant dense<0.000000e+00> : vector<4x6xf32>
    %42 = vector.multi_reduction <add>, %41, %cst_11 [2] : vector<4x6x6xf32> to vector<4x6xf32>
    %43 = vector.shape_cast %42 : vector<4x6xf32> to vector<4x6x1xf32>
    %44 = vector.broadcast %43 : vector<4x6x1xf32> to vector<4x6x6xf32>
    %45 = arith.divf %41, %44 : vector<4x6x6xf32>
    %46 = vector.extract_strided_slice %45 {offsets = [0, 0, 0], sizes = [1, 6, 6], strides = [1, 1, 1]} : vector<4x6x6xf32> to vector<1x6x6xf32>
    %47 = vector.shape_cast %46 : vector<1x6x6xf32> to vector<6x6xf32>
    %48 = vector.extract_strided_slice %45 {offsets = [1, 0, 0], sizes = [1, 6, 6], strides = [1, 1, 1]} : vector<4x6x6xf32> to vector<1x6x6xf32>
    %49 = vector.shape_cast %48 : vector<1x6x6xf32> to vector<6x6xf32>
    %50 = vector.extract_strided_slice %45 {offsets = [2, 0, 0], sizes = [1, 6, 6], strides = [1, 1, 1]} : vector<4x6x6xf32> to vector<1x6x6xf32>
    %51 = vector.shape_cast %50 : vector<1x6x6xf32> to vector<6x6xf32>
    %52 = vector.extract_strided_slice %45 {offsets = [3, 0, 0], sizes = [1, 6, 6], strides = [1, 1, 1]} : vector<4x6x6xf32> to vector<1x6x6xf32>
    %53 = vector.shape_cast %52 : vector<1x6x6xf32> to vector<6x6xf32>
    %54 = tpu.concatenate %47, %49, %51, %53 in 0 : vector<6x6xf32>, vector<6x6xf32>, vector<6x6xf32>, vector<6x6xf32> -> vector<24x6xf32>
    %55 = vector.extract_strided_slice %3 {offsets = [72, 0], sizes = [24, 12], strides = [1, 1]} : vector<96x12xf32> to vector<24x12xf32>
    %56 = vector.extract_strided_slice %55 {offsets = [0, 0], sizes = [6, 12], strides = [1, 1]} : vector<24x12xf32> to vector<6x12xf32>
    %57 = vector.extract_strided_slice %55 {offsets = [6, 0], sizes = [6, 12], strides = [1, 1]} : vector<24x12xf32> to vector<6x12xf32>
    %58 = vector.extract_strided_slice %55 {offsets = [12, 0], sizes = [6, 12], strides = [1, 1]} : vector<24x12xf32> to vector<6x12xf32>
    %59 = vector.extract_strided_slice %55 {offsets = [18, 0], sizes = [6, 12], strides = [1, 1]} : vector<24x12xf32> to vector<6x12xf32>
    %60 = vector.shape_cast %56 : vector<6x12xf32> to vector<1x6x12xf32>
    %61 = vector.shape_cast %57 : vector<6x12xf32> to vector<1x6x12xf32>
    %62 = vector.shape_cast %58 : vector<6x12xf32> to vector<1x6x12xf32>
    %63 = vector.shape_cast %59 : vector<6x12xf32> to vector<1x6x12xf32>
    %64 = tpu.concatenate %60, %61, %62, %63 in 0 : vector<1x6x12xf32>, vector<1x6x12xf32>, vector<1x6x12xf32>, vector<1x6x12xf32> -> vector<4x6x12xf32>
    %65 = vector.extract_strided_slice %64 {offsets = [0, 0, 9], sizes = [4, 6, 1], strides = [1, 1, 1]} : vector<4x6x12xf32> to vector<4x6x1xf32>
    %66 = vector.shape_cast %65 : vector<4x6x1xf32> to vector<4x6xf32>
    %67 = vector.extract_strided_slice %64 {offsets = [0, 0, 11], sizes = [4, 6, 1], strides = [1, 1, 1]} : vector<4x6x12xf32> to vector<4x6x1xf32>
    %68 = vector.shape_cast %67 : vector<4x6x1xf32> to vector<4x6xf32>
    %69 = vector.shape_cast %66 : vector<4x6xf32> to vector<4x6x1xf32>
    %70 = vector.shape_cast %68 : vector<4x6xf32> to vector<4x1x6xf32>
    %71 = vector.broadcast %69 : vector<4x6x1xf32> to vector<4x6x6xf32>
    %72 = vector.broadcast %70 : vector<4x1x6xf32> to vector<4x6x6xf32>
    %73 = arith.addf %71, %72 : vector<4x6x6xf32>
    %cst_12 = arith.constant 0.000000e+00 : f32
    %74 = vector.broadcast %cst_12 : f32 to vector<4x6x6xf32>
    %75 = arith.cmpf ogt, %73, %74 : vector<4x6x6xf32>
    %cst_13 = arith.constant 2.000000e-01 : f32
    %76 = vector.broadcast %cst_13 : f32 to vector<4x6x6xf32>
    %77 = arith.mulf %76, %73 : vector<4x6x6xf32>
    %78 = arith.select %75, %73, %77 : vector<4x6x6xi1>, vector<4x6x6xf32>
    %79 = vector.extract_strided_slice %0 {offsets = [1, 0, 0], sizes = [1, 6, 6], strides = [1, 1, 1]} : vector<2x6x6xf32> to vector<1x6x6xf32>
    %80 = vector.shape_cast %79 : vector<1x6x6xf32> to vector<6x6xf32>
    %81 = vector.shape_cast %80 : vector<6x6xf32> to vector<1x6x6xf32>
    %cst_14 = arith.constant 0.000000e+00 : f32
    %82 = vector.broadcast %cst_14 : f32 to vector<1x6x6xf32>
    %83 = arith.cmpf ogt, %81, %82 : vector<1x6x6xf32>
    %cst_15 = arith.constant -9.000000e+15 : f32
    %84 = vector.shape_cast %83 : vector<1x6x6xi1> to vector<1x6x6xi1>
    %85 = vector.broadcast %84 : vector<1x6x6xi1> to vector<4x6x6xi1>
    %86 = vector.broadcast %cst_15 : f32 to vector<4x6x6xf32>
    %87 = arith.select %85, %78, %86 : vector<4x6x6xi1>, vector<4x6x6xf32>
    %cst_16 = arith.constant dense<0xFF800000> : vector<4x6xf32>
    %88 = vector.multi_reduction <maximumf>, %87, %cst_16 [2] : vector<4x6x6xf32> to vector<4x6xf32>
    %89 = vector.shape_cast %88 : vector<4x6xf32> to vector<4x6x1xf32>
    %90 = vector.broadcast %89 : vector<4x6x1xf32> to vector<4x6x6xf32>
    %91 = arith.subf %87, %90 : vector<4x6x6xf32>
    %92 = math.exp %91 : vector<4x6x6xf32>
    %cst_17 = arith.constant dense<0.000000e+00> : vector<4x6xf32>
    %93 = vector.multi_reduction <add>, %92, %cst_17 [2] : vector<4x6x6xf32> to vector<4x6xf32>
    %94 = vector.shape_cast %93 : vector<4x6xf32> to vector<4x6x1xf32>
    %95 = vector.broadcast %94 : vector<4x6x1xf32> to vector<4x6x6xf32>
    %96 = arith.divf %92, %95 : vector<4x6x6xf32>
    %97 = vector.extract_strided_slice %96 {offsets = [0, 0, 0], sizes = [1, 6, 6], strides = [1, 1, 1]} : vector<4x6x6xf32> to vector<1x6x6xf32>
    %98 = vector.shape_cast %97 : vector<1x6x6xf32> to vector<6x6xf32>
    %99 = vector.extract_strided_slice %96 {offsets = [1, 0, 0], sizes = [1, 6, 6], strides = [1, 1, 1]} : vector<4x6x6xf32> to vector<1x6x6xf32>
    %100 = vector.shape_cast %99 : vector<1x6x6xf32> to vector<6x6xf32>
    %101 = vector.extract_strided_slice %96 {offsets = [2, 0, 0], sizes = [1, 6, 6], strides = [1, 1, 1]} : vector<4x6x6xf32> to vector<1x6x6xf32>
    %102 = vector.shape_cast %101 : vector<1x6x6xf32> to vector<6x6xf32>
    %103 = vector.extract_strided_slice %96 {offsets = [3, 0, 0], sizes = [1, 6, 6], strides = [1, 1, 1]} : vector<4x6x6xf32> to vector<1x6x6xf32>
    %104 = vector.shape_cast %103 : vector<1x6x6xf32> to vector<6x6xf32>
    %105 = tpu.concatenate %98, %100, %102, %104 in 0 : vector<6x6xf32>, vector<6x6xf32>, vector<6x6xf32>, vector<6x6xf32> -> vector<24x6xf32>
    %106 = tpu.concatenate %54, %54, %105, %105 in 0 : vector<24x6xf32>, vector<24x6xf32>, vector<24x6xf32>, vector<24x6xf32> -> vector<96x6xf32>
    %107 = tpu.iota {dimensions = array<i32: 0>} : vector<96x6xi32>
    %c0_i32 = arith.constant 0 : i32
    %108 = vector.broadcast %c0_i32 : i32 to vector<96x6xi32>
    %109 = arith.cmpi sge, %107, %108 : vector<96x6xi32>
    %c6_i32 = arith.constant 6 : i32
    %110 = vector.broadcast %c6_i32 : i32 to vector<96x6xi32>
    %111 = arith.cmpi slt, %107, %110 : vector<96x6xi32>
    %112 = arith.andi %109, %111 : vector<96x6xi1>
    %cst_18 = arith.constant 0.000000e+00 : f32
    %113 = vector.broadcast %cst_18 : f32 to vector<96x6xf32>
    %114 = arith.select %112, %106, %113 : vector<96x6xi1>, vector<96x6xf32>
    %c6_i32_19 = arith.constant 6 : i32
    %115 = vector.broadcast %c6_i32_19 : i32 to vector<96x6xi32>
    %116 = arith.cmpi sge, %107, %115 : vector<96x6xi32>
    %c12_i32 = arith.constant 12 : i32
    %117 = vector.broadcast %c12_i32 : i32 to vector<96x6xi32>
    %118 = arith.cmpi slt, %107, %117 : vector<96x6xi32>
    %119 = arith.andi %116, %118 : vector<96x6xi1>
    %cst_20 = arith.constant 0.000000e+00 : f32
    %120 = vector.broadcast %cst_20 : f32 to vector<96x6xf32>
    %121 = arith.select %119, %106, %120 : vector<96x6xi1>, vector<96x6xf32>
    %c12_i32_21 = arith.constant 12 : i32
    %122 = vector.broadcast %c12_i32_21 : i32 to vector<96x6xi32>
    %123 = arith.cmpi sge, %107, %122 : vector<96x6xi32>
    %c18_i32 = arith.constant 18 : i32
    %124 = vector.broadcast %c18_i32 : i32 to vector<96x6xi32>
    %125 = arith.cmpi slt, %107, %124 : vector<96x6xi32>
    %126 = arith.andi %123, %125 : vector<96x6xi1>
    %cst_22 = arith.constant 0.000000e+00 : f32
    %127 = vector.broadcast %cst_22 : f32 to vector<96x6xf32>
    %128 = arith.select %126, %106, %127 : vector<96x6xi1>, vector<96x6xf32>
    %c18_i32_23 = arith.constant 18 : i32
    %129 = vector.broadcast %c18_i32_23 : i32 to vector<96x6xi32>
    %130 = arith.cmpi sge, %107, %129 : vector<96x6xi32>
    %c24_i32 = arith.constant 24 : i32
    %131 = vector.broadcast %c24_i32 : i32 to vector<96x6xi32>
    %132 = arith.cmpi slt, %107, %131 : vector<96x6xi32>
    %133 = arith.andi %130, %132 : vector<96x6xi1>
    %cst_24 = arith.constant 0.000000e+00 : f32
    %134 = vector.broadcast %cst_24 : f32 to vector<96x6xf32>
    %135 = arith.select %133, %106, %134 : vector<96x6xi1>, vector<96x6xf32>
    %c24_i32_25 = arith.constant 24 : i32
    %136 = vector.broadcast %c24_i32_25 : i32 to vector<96x6xi32>
    %137 = arith.cmpi sge, %107, %136 : vector<96x6xi32>
    %c30_i32 = arith.constant 30 : i32
    %138 = vector.broadcast %c30_i32 : i32 to vector<96x6xi32>
    %139 = arith.cmpi slt, %107, %138 : vector<96x6xi32>
    %140 = arith.andi %137, %139 : vector<96x6xi1>
    %cst_26 = arith.constant 0.000000e+00 : f32
    %141 = vector.broadcast %cst_26 : f32 to vector<96x6xf32>
    %142 = arith.select %140, %106, %141 : vector<96x6xi1>, vector<96x6xf32>
    %c30_i32_27 = arith.constant 30 : i32
    %143 = vector.broadcast %c30_i32_27 : i32 to vector<96x6xi32>
    %144 = arith.cmpi sge, %107, %143 : vector<96x6xi32>
    %c36_i32 = arith.constant 36 : i32
    %145 = vector.broadcast %c36_i32 : i32 to vector<96x6xi32>
    %146 = arith.cmpi slt, %107, %145 : vector<96x6xi32>
    %147 = arith.andi %144, %146 : vector<96x6xi1>
    %cst_28 = arith.constant 0.000000e+00 : f32
    %148 = vector.broadcast %cst_28 : f32 to vector<96x6xf32>
    %149 = arith.select %147, %106, %148 : vector<96x6xi1>, vector<96x6xf32>
    %c36_i32_29 = arith.constant 36 : i32
    %150 = vector.broadcast %c36_i32_29 : i32 to vector<96x6xi32>
    %151 = arith.cmpi sge, %107, %150 : vector<96x6xi32>
    %c42_i32 = arith.constant 42 : i32
    %152 = vector.broadcast %c42_i32 : i32 to vector<96x6xi32>
    %153 = arith.cmpi slt, %107, %152 : vector<96x6xi32>
    %154 = arith.andi %151, %153 : vector<96x6xi1>
    %cst_30 = arith.constant 0.000000e+00 : f32
    %155 = vector.broadcast %cst_30 : f32 to vector<96x6xf32>
    %156 = arith.select %154, %106, %155 : vector<96x6xi1>, vector<96x6xf32>
    %c42_i32_31 = arith.constant 42 : i32
    %157 = vector.broadcast %c42_i32_31 : i32 to vector<96x6xi32>
    %158 = arith.cmpi sge, %107, %157 : vector<96x6xi32>
    %c48_i32 = arith.constant 48 : i32
    %159 = vector.broadcast %c48_i32 : i32 to vector<96x6xi32>
    %160 = arith.cmpi slt, %107, %159 : vector<96x6xi32>
    %161 = arith.andi %158, %160 : vector<96x6xi1>
    %cst_32 = arith.constant 0.000000e+00 : f32
    %162 = vector.broadcast %cst_32 : f32 to vector<96x6xf32>
    %163 = arith.select %161, %106, %162 : vector<96x6xi1>, vector<96x6xf32>
    %c48_i32_33 = arith.constant 48 : i32
    %164 = vector.broadcast %c48_i32_33 : i32 to vector<96x6xi32>
    %165 = arith.cmpi sge, %107, %164 : vector<96x6xi32>
    %c54_i32 = arith.constant 54 : i32
    %166 = vector.broadcast %c54_i32 : i32 to vector<96x6xi32>
    %167 = arith.cmpi slt, %107, %166 : vector<96x6xi32>
    %168 = arith.andi %165, %167 : vector<96x6xi1>
    %cst_34 = arith.constant 0.000000e+00 : f32
    %169 = vector.broadcast %cst_34 : f32 to vector<96x6xf32>
    %170 = arith.select %168, %106, %169 : vector<96x6xi1>, vector<96x6xf32>
    %c54_i32_35 = arith.constant 54 : i32
    %171 = vector.broadcast %c54_i32_35 : i32 to vector<96x6xi32>
    %172 = arith.cmpi sge, %107, %171 : vector<96x6xi32>
    %c60_i32 = arith.constant 60 : i32
    %173 = vector.broadcast %c60_i32 : i32 to vector<96x6xi32>
    %174 = arith.cmpi slt, %107, %173 : vector<96x6xi32>
    %175 = arith.andi %172, %174 : vector<96x6xi1>
    %cst_36 = arith.constant 0.000000e+00 : f32
    %176 = vector.broadcast %cst_36 : f32 to vector<96x6xf32>
    %177 = arith.select %175, %106, %176 : vector<96x6xi1>, vector<96x6xf32>
    %c60_i32_37 = arith.constant 60 : i32
    %178 = vector.broadcast %c60_i32_37 : i32 to vector<96x6xi32>
    %179 = arith.cmpi sge, %107, %178 : vector<96x6xi32>
    %c66_i32 = arith.constant 66 : i32
    %180 = vector.broadcast %c66_i32 : i32 to vector<96x6xi32>
    %181 = arith.cmpi slt, %107, %180 : vector<96x6xi32>
    %182 = arith.andi %179, %181 : vector<96x6xi1>
    %cst_38 = arith.constant 0.000000e+00 : f32
    %183 = vector.broadcast %cst_38 : f32 to vector<96x6xf32>
    %184 = arith.select %182, %106, %183 : vector<96x6xi1>, vector<96x6xf32>
    %c66_i32_39 = arith.constant 66 : i32
    %185 = vector.broadcast %c66_i32_39 : i32 to vector<96x6xi32>
    %186 = arith.cmpi sge, %107, %185 : vector<96x6xi32>
    %c72_i32 = arith.constant 72 : i32
    %187 = vector.broadcast %c72_i32 : i32 to vector<96x6xi32>
    %188 = arith.cmpi slt, %107, %187 : vector<96x6xi32>
    %189 = arith.andi %186, %188 : vector<96x6xi1>
    %cst_40 = arith.constant 0.000000e+00 : f32
    %190 = vector.broadcast %cst_40 : f32 to vector<96x6xf32>
    %191 = arith.select %189, %106, %190 : vector<96x6xi1>, vector<96x6xf32>
    %c72_i32_41 = arith.constant 72 : i32
    %192 = vector.broadcast %c72_i32_41 : i32 to vector<96x6xi32>
    %193 = arith.cmpi sge, %107, %192 : vector<96x6xi32>
    %c78_i32 = arith.constant 78 : i32
    %194 = vector.broadcast %c78_i32 : i32 to vector<96x6xi32>
    %195 = arith.cmpi slt, %107, %194 : vector<96x6xi32>
    %196 = arith.andi %193, %195 : vector<96x6xi1>
    %cst_42 = arith.constant 0.000000e+00 : f32
    %197 = vector.broadcast %cst_42 : f32 to vector<96x6xf32>
    %198 = arith.select %196, %106, %197 : vector<96x6xi1>, vector<96x6xf32>
    %c78_i32_43 = arith.constant 78 : i32
    %199 = vector.broadcast %c78_i32_43 : i32 to vector<96x6xi32>
    %200 = arith.cmpi sge, %107, %199 : vector<96x6xi32>
    %c84_i32 = arith.constant 84 : i32
    %201 = vector.broadcast %c84_i32 : i32 to vector<96x6xi32>
    %202 = arith.cmpi slt, %107, %201 : vector<96x6xi32>
    %203 = arith.andi %200, %202 : vector<96x6xi1>
    %cst_44 = arith.constant 0.000000e+00 : f32
    %204 = vector.broadcast %cst_44 : f32 to vector<96x6xf32>
    %205 = arith.select %203, %106, %204 : vector<96x6xi1>, vector<96x6xf32>
    %c84_i32_45 = arith.constant 84 : i32
    %206 = vector.broadcast %c84_i32_45 : i32 to vector<96x6xi32>
    %207 = arith.cmpi sge, %107, %206 : vector<96x6xi32>
    %c90_i32 = arith.constant 90 : i32
    %208 = vector.broadcast %c90_i32 : i32 to vector<96x6xi32>
    %209 = arith.cmpi slt, %107, %208 : vector<96x6xi32>
    %210 = arith.andi %207, %209 : vector<96x6xi1>
    %cst_46 = arith.constant 0.000000e+00 : f32
    %211 = vector.broadcast %cst_46 : f32 to vector<96x6xf32>
    %212 = arith.select %210, %106, %211 : vector<96x6xi1>, vector<96x6xf32>
    %c90_i32_47 = arith.constant 90 : i32
    %213 = vector.broadcast %c90_i32_47 : i32 to vector<96x6xi32>
    %214 = arith.cmpi sge, %107, %213 : vector<96x6xi32>
    %c96_i32 = arith.constant 96 : i32
    %215 = vector.broadcast %c96_i32 : i32 to vector<96x6xi32>
    %216 = arith.cmpi slt, %107, %215 : vector<96x6xi32>
    %217 = arith.andi %214, %216 : vector<96x6xi1>
    %cst_48 = arith.constant 0.000000e+00 : f32
    %218 = vector.broadcast %cst_48 : f32 to vector<96x6xf32>
    %219 = arith.select %217, %106, %218 : vector<96x6xi1>, vector<96x6xf32>
    %220 = tpu.concatenate %114, %121, %128, %135, %142, %149, %156, %163, %170, %177, %184, %191, %198, %205, %212, %219 in 1 : vector<96x6xf32>, vector<96x6xf32>, vector<96x6xf32>, vector<96x6xf32>, vector<96x6xf32>, vector<96x6xf32>, vector<96x6xf32>, vector<96x6xf32>, vector<96x6xf32>, vector<96x6xf32>, vector<96x6xf32>, vector<96x6xf32>, vector<96x6xf32>, vector<96x6xf32>, vector<96x6xf32>, vector<96x6xf32> -> vector<96x96xf32>
    %221 = vector.extract_strided_slice %3 {offsets = [0, 0], sizes = [96, 8], strides = [1, 1]} : vector<96x12xf32> to vector<96x8xf32>
    %cst_49 = arith.constant dense<0.000000e+00> : vector<96x8xf32>
    %222 = tpu.matmul %220, %221, %cst_49 {dimension_numbers = #tpu.dot_dimension_numbers<[1], [0], [0], [1], [0, 0, 1, 1], [], []>} : vector<96x96xf32>, vector<96x8xf32>, vector<96x8xf32> -> vector<96x8xf32>
    %cst_50 = arith.constant 0.000000e+00 : f32
    %223 = vector.broadcast %cst_50 : f32 to vector<96x8xf32>
    %224 = arith.cmpf ogt, %222, %223 : vector<96x8xf32>
    %cst_51 = arith.constant 0.000000e+00 : f32
    %225 = vector.broadcast %cst_51 : f32 to vector<96x8xf32>
    %226 = arith.minimumf %222, %225 : vector<96x8xf32>
    %227 = math.exp %226 : vector<96x8xf32>
    %cst_52 = arith.constant 1.000000e+00 : f32
    %228 = vector.broadcast %cst_52 : f32 to vector<96x8xf32>
    %229 = arith.subf %227, %228 : vector<96x8xf32>
    %230 = arith.select %224, %222, %229 : vector<96x8xi1>, vector<96x8xf32>
    %c0_53 = arith.constant 0 : index
    %c0_54 = arith.constant 0 : index
    %231 = vector.load %arg4[%c0_53, %c0_54] : memref<96x8xf32, #tpu.memory_space<vmem>>, vector<96x8xf32>
    tpu.vector_store %arg4[%c0_53, %c0_54], %230 {strides = array<i32>} : memref<96x8xf32, #tpu.memory_space<vmem>>, vector<96x8xf32>,
    return
  }
  func.func @transform_0(%arg0: i32) -> (i32, i32) {
    %c0_i32 = arith.constant 0 : i32
    %c0_i32_0 = arith.constant 0 : i32
    %c0_i32_1 = arith.constant 0 : i32
    return %c0_i32, %c0_i32_0 : i32, i32
  }
  func.func @transform_1(%arg0: i32) -> (i32, i32, i32) {
    %c0_i32 = arith.constant 0 : i32
    %c0_i32_0 = arith.constant 0 : i32
    %c0_i32_1 = arith.constant 0 : i32
    %c0_i32_2 = arith.constant 0 : i32
    return %c0_i32, %c0_i32_0, %c0_i32_1 : i32, i32, i32
  }
  func.func @transform_2(%arg0: i32) -> (i32, i32) {
    %c0_i32 = arith.constant 0 : i32
    %c0_i32_0 = arith.constant 0 : i32
    %c0_i32_1 = arith.constant 0 : i32
    return %c0_i32, %c0_i32_0 : i32, i32
  }
  func.func @transform_3(%arg0: i32) -> (i32, i32) {
    %c0_i32 = arith.constant 0 : i32
    %c0_i32_0 = arith.constant 0 : i32
    %c0_i32_1 = arith.constant 0 : i32
    return %c0_i32, %c0_i32_0 : i32, i32
  }
}

</mosaic_0001>

<bundles_post_ra>
// kernel: tpu_custom_call.1
= control target key start
LH: loop header
LB: loop body
LE: loop exit
PB: predicated region body
PF: predicated region fallthrough
CT: control target
= control target key end

     0   :  { %vm4212_vm0 = vcmask 64512   ;;  %v4204_v4 = vmov 0.0   ;;  %s3085_s20 = smov 6   ;;  %s3086_s28 = smov 12   ;;  %v3100_v14 = vmov 10   ;;  %v3101_v15 = vmov 8   ;;  %s4200_s2 = inlined_call_operand.vmem [shape: f32[8,12], index: 2, kind: input, shape index: {}]   ;;  %s4201_s0 = inlined_call_operand.vmem [shape: f32[96,8], index: 0, kind: input, shape index: {}]   ;;  %s4202_s1 = inlined_call_operand.vmem [shape: f32[2,6,6], index: 1, kind: input, shape index: {}]   ;;  %s4203_s3 = inlined_call_operand.vmem [shape: f32[96,8], index: 3, kind: output, shape index: {}]  }
   0x1   :  { %v28_v0 = vld [vmem:[%s4200_s2] sm:$0xff]  ;;  %v17_v2 = vld [vmem:[%s4201_s0 + $0x8] sm:$0xff]  ;;  %v18_v3 = vld [vmem:[%s4201_s0 + $0x10] sm:$0xff]  ;;  %2645 = vrot.lane.b32.xlu1 %v4204_v4, %s3085_s20  ;;  %s3087_s10 = smov 18   ;;  %s3089_s13 = smov 42   ;;  %2904 = vset.pattern.permute.xlu0 %v3100_v14  ;;  %vm2008_vm1 = vcmask 48128  }
   0x2   :  { %v16_v1 = vld [vmem:[%s4201_s0] sm:$0xff]  ;;  %2526 = vmatprep.subr.mxu0 %v28_v0  ;;  %2655 = vrot.lane.b32.xlu0 %v4204_v4, %s3085_s20  ;;  %v19_v5 = vld [vmem:[%s4201_s0 + $0x18] sm:$0xff]  ;;  %v21_v7 = vld [vmem:[%s4201_s0 + $0x28] sm:$0xff]  ;;  %s3090_s14 = smov 30   ;;  %s3091_s15 = smov 48   ;;  %vm2021_vm2 = vcmask 97280  }
   0x3   :  { %2528 = vmatprep.mubr.msk.f32.mxu0 %vm4212_vm0, %v16_v1  ;;  %2527 = vmatpush3.msra.mxu0 %v28_v0  ;;  %v20_v6 = vld [vmem:[%s4201_s0 + $0x20] sm:$0xff]  ;;  %v22_v8 = vld [vmem:[%s4201_s0 + $0x30] sm:$0xff]  ;;  %v23_v9 = vld [vmem:[%s4201_s0 + $0x38] sm:$0xff]  ;;  %s3092_s16 = smov 54   ;;  %s3093_s17 = smov 36   ;;  %vm2034_vm3 = vcmask 146432  }
   0x4   :  { %2529 = vmatmul.mubr.msk.f32.vlgmr.msra.gmra.mrb[0].mxu0 %vm4212_vm0, %v17_v2  ;;  %v24_v10 = vld [vmem:[%s4201_s0 + $0x40] sm:$0xff]  ;;  %v25_v11 = vld [vmem:[%s4201_s0 + $0x48] sm:$0xff]  ;;  %v26_v12 = vld [vmem:[%s4201_s0 + $0x50] sm:$0xff]  ;;  %s3094_s18 = smov 60   ;;  %s3095_s19 = smov 66   ;;  %2907 = vset.pattern.permute.xlu1 %v3101_v15  ;;  %vm2047_vm4 = vcmask 195584  }
   0x5   :  { %2531 = vmatprep.mubr.msk.f32.mxu0 %vm4212_vm0, %v18_v3  ;;  %2650 = vrot.lane.b32.xlu1 %v4204_v4, %s3085_s20  ;;  %v27_v13 = vld [vmem:[%s4201_s0 + $0x58] sm:$0xff]  ;;  %s3088_s0 = smov 24   ;;  %s3096_s2 = smov 72   ;;  %vm4213_vm5 = vcmask 244736   ;;  %vm4225_vm6 = vcmask 293888   ;;  %vm4224_vm7 = vcmask 343040  }
   0x6   :  { %2665 = vrot.lane.b32.xlu0 %v4204_v4, %s3085_s20  ;;  %s3097_s21 = smov 78   ;;  %s3098_s22 = smov 84   ;;  %vm4223_vm8 = vcmask 392192   ;;  %vm2112_vm9 = vcmask 441344   ;;  %vm193_vm10 = vcmask 1041408   ;;  %vm198_vm11 = vcmask 1043456  }
   0x7   :  { %s3099_s23 = smov 90   ;;  %vm296_vm14 = vcmask 46080  }
   0x8   :  { %2532 = vmatmul.mubr.msk.f32.gmra.mrb[2].mxu0 %vm4212_vm0, %v19_v5 }
   0x9   :  { %2534 = vmatprep.mubr.msk.f32.mxu0 %vm4212_vm0, %v20_v6  ;;  %2660 = vrot.lane.b32.xlu1 %v4204_v4, %s3085_s20 }
   0xa   :  { %2675 = vrot.lane.b32.xlu0 %v4204_v4, %s3086_s28 }
   0xc   :  { %2535 = vmatmul.mubr.msk.f32.gmra.mrb[4].mxu0 %vm4212_vm0, %v21_v7 }
   0xd   :  { %2537 = vmatprep.mubr.msk.f32.mxu0 %vm4212_vm0, %v22_v8  ;;  %2670 = vrot.lane.b32.xlu1 %v4204_v4, %s3086_s28 }
   0xe   :  { %2685 = vrot.lane.b32.xlu0 %v4204_v4, %s3086_s28 }
  0x10   :  { %2538 = vmatmul.mubr.msk.f32.gmra.mrb[6].mxu0 %vm4212_vm0, %v23_v9 }
  0x11   :  { %2540 = vmatprep.mubr.msk.f32.mxu0 %vm4212_vm0, %v24_v10  ;;  %2680 = vrot.lane.b32.xlu1 %v4204_v4, %s3086_s28 }
  0x12   :  { %2695 = vrot.lane.b32.xlu0 %v4204_v4, %s3087_s10 }
  0x14   :  { %2541 = vmatmul.mubr.msk.f32.gmra.mrb[8].mxu0 %vm4212_vm0, %v25_v11 }
  0x15   :  { %2543 = vmatprep.mubr.msk.f32.mxu0 %vm4212_vm0, %v26_v12  ;;  %2690 = vrot.lane.b32.xlu1 %v4204_v4, %s3086_s28 }
  0x16   :  { %2700 = vrot.lane.b32.xlu0 %v4204_v4, %s3087_s10 }
  0x18   :  { %2544 = vmatmul.mubr.msk.f32.gmra.mrb[10].mxu0 %vm4212_vm0, %v27_v13 }
  0x19   :  { %2705 = vrot.lane.b32.xlu1 %v4204_v4, %s3087_s10 }
  0x1a   :  { %2710 = vrot.lane.b32.xlu0 %v4204_v4, %s3087_s10 }
  0x1d   :  { %2715 = vrot.lane.b32.xlu1 %v4204_v4, %s3087_s10 }
  0x1e   :  { %1418 = vrot.lane.b32.xlu0 %v4204_v4, %s3087_s10 }
  0x21   :  { %2720 = vrot.lane.b32.xlu1 %v4204_v4, %s3088_s0 }
  0x22   :  { %2725 = vrot.lane.b32.xlu0 %v4204_v4, %s3088_s0 }
  0x25   :  { %2730 = vrot.lane.b32.xlu1 %v4204_v4, %s3088_s0 }
  0x26   :  { %2740 = vrot.lane.b32.xlu0 %v4204_v4, %s3089_s13 }
  0x29   :  { %2735 = vrot.lane.b32.xlu1 %v4204_v4, %s3090_s14 }
  0x2a   :  { %2745 = vrot.lane.b32.xlu0 %v4204_v4, %s3091_s15 }
  0x2d   :  { %2750 = vrot.lane.b32.xlu1 %v4204_v4, %s3088_s0 }
  0x2e   :  { %2755 = vrot.lane.b32.xlu0 %v4204_v4, %s3092_s16 }
  0x31   :  { %2760 = vrot.lane.b32.xlu1 %v4204_v4, %s3090_s14 }
  0x32   :  { %2765 = vrot.lane.b32.xlu0 %v4204_v4, %s3093_s17 }
  0x35   :  { %2770 = vrot.lane.b32.xlu1 %v4204_v4, %s3094_s18 }
  0x36   :  { %2775 = vrot.lane.b32.xlu0 %v4204_v4, %s3095_s19 }
  0x39   :  { %2780 = vrot.lane.b32.xlu1 %v4204_v4, %s3089_s13 }
  0x3a   :  { %2790 = vrot.lane.b32.xlu0 %v4204_v4, %s3088_s0 }
  0x3d   :  { %2785 = vrot.lane.b32.xlu1 %v4204_v4, %s3096_s2 }
  0x3e   :  { %2800 = vrot.lane.b32.xlu0 %v4204_v4, %s3091_s15 }
  0x41   :  { %2795 = vrot.lane.b32.xlu1 %v4204_v4, %s3090_s14 }
  0x42   :  { %2805 = vrot.lane.b32.xlu0 %v4204_v4, %s3097_s21 }
  0x45   :  { %2810 = vrot.lane.b32.xlu1 %v4204_v4, %s3090_s14 }
  0x46   :  { %2815 = vrot.lane.b32.xlu0 %v4204_v4, %s3093_s17 }
  0x49   :  { %2825 = vrot.lane.b32.xlu1 %v4204_v4, %s3098_s22 }
  0x4a   :  { %2820 = vrot.lane.b32.xlu0 %v4204_v4, %s3094_s18 }
  0x4d   :  { %2835 = vrot.lane.b32.xlu1 %v4204_v4, %s3089_s13 }
  0x4e   :  { %2830 = vrot.lane.b32.xlu0 %v4204_v4, %s3093_s17 }
  0x51   :  { %2840 = vrot.lane.b32.xlu1 %v4204_v4, %s3095_s19 }
  0x52   :  { %2845 = vrot.lane.b32.xlu0 %v4204_v4, %s3099_s23 }
  0x55   :  { %2850 = vrot.lane.b32.xlu1 %v4204_v4, %s3089_s13 }
  0x56   :  { %2855 = vrot.lane.b32.xlu0 %v4204_v4, %s3091_s15 }
  0x59   :  { %2860 = vrot.lane.b32.xlu1 %v4204_v4, %s3096_s2 }
  0x5a   :  { %2865 = vrot.lane.b32.xlu0 %v4204_v4, %s3090_s14 }
  0x5d   :  { %1466 = vrot.lane.b32.xlu1 %v4204_v4, %s3088_s0 }
  0x5e   :  { %2875 = vrot.lane.b32.xlu0 %v4204_v4, %s3092_s16 }
  0x61   :  { %2870 = vrot.lane.b32.xlu1 %v4204_v4, %s3091_s15 }
  0x62   :  { %2890 = vrot.lane.b32.xlu0 %v4204_v4, %s3092_s16 }
  0x65   :  { %2880 = vrot.lane.b32.xlu1 %v4204_v4, %s3097_s21 }
  0x66   :  { %2895 = vrot.lane.b32.xlu0 %v4204_v4, %s3098_s22 }
  0x69   :  { %2885 = vrot.lane.b32.xlu1 %v4204_v4, %s3093_s17 }
  0x6d   :  { %2900 = vrot.lane.b32.xlu1 %v4204_v4, %s3093_s17 }
  0x73   :  { %v3285_v16 = vpop.permute.xlu1 %2645 }
  0x74   :  { %v3287_v17 = vpop.permute.xlu0 %2655 }
  0x75   :  { %4242 = vst [vmem:[#allocation2_spill] sm:$0xff] %v3287_v17 }
  0x77   :  { %v3289_v18 = vpop.permute.xlu1 %2650 }
  0x78   :  { %v3291_v19 = vpop.permute.xlu0 %2665 }
  0x79   :  { %v2668_v9 = vunpack.i.h.bf16 %v3291_v19 }
  0x7b   :  { %v2661_v20 = vpop.permute.xlu1 %2660 }
  0x7c   :  { %v3293_v21 = vpop.permute.xlu0 %2675  ;;  %v2663_v49 = vunpack.i.h.bf16 %v2661_v20  ;;  %v2662_v51 = vunpack.i.l.bf16 %v2661_v20 }
  0x7e   :  { %v2018_v54 = vsel %vm2008_vm1, 0.0, %v2663_v49  ;;  %v2017_v58 = vsel %vm2008_vm1, 0.0, %v2662_v51 }
  0x7f   :  { %v3295_v22 = vpop.permute.xlu1 %2670 }
  0x80   :  { %v2686_v23 = vpop.permute.xlu0 %2685 }
  0x81   :  { %v2688_v52 = vunpack.i.h.bf16 %v2686_v23  ;;  %v2687_v57 = vunpack.i.l.bf16 %v2686_v23 }
  0x83   :  { %v3297_v24 = vpop.permute.xlu1 %2680  ;;  %v2031_v59 = vsel %vm2021_vm2, %v2018_v54, %v2688_v52  ;;  %v2030_v0 = vsel %vm2021_vm2, %v2017_v58, %v2687_v57  ;;  %v2020_v52 = vsel %vm2008_vm1, 0.0, %v2668_v9 }
  0x84   :  { %4243 = vst [vmem:[#allocation3_spill] sm:$0xff] %v3297_v24  ;;  %v3299_v25 = vpop.permute.xlu0 %2695 }
  0x87   :  { %v3301_v26 = vpop.permute.xlu1 %2690 }
  0x88   :  { %v3303_v27 = vpop.permute.xlu0 %2700  ;;  %v2693_v49 = vunpack.i.h.bf16 %v3301_v26  ;;  %v2692_v9 = vunpack.i.l.bf16 %v3301_v26 }
  0x8b   :  { %v3305_v28 = vpop.permute.xlu1 %2705 }
  0x8c   :  { %4244 = vst [vmem:[#allocation4_spill] sm:$0xff] %v3305_v28  ;;  %v3307_v29 = vpop.permute.xlu0 %2710 }
  0x8d   :  { %4245 = vst [vmem:[#allocation5_spill] sm:$0xff] %v3307_v29  ;;  %v2713_v62 = vunpack.i.h.bf16 %v3307_v29 }
  0x8f   :  { %v3309_v30 = vpop.permute.xlu1 %2715  ;;  %v2043_v7 = vsel %vm2034_vm3, %v2030_v0, %v2713_v62  ;;  %v2033_v0 = vsel %vm2021_vm2, %v2020_v52, %v2693_v49 }
  0x90   :  { %v3311_v31 = vpop.permute.xlu0 %1418  ;;  %v2717_v56 = vunpack.i.l.bf16 %v3309_v30  ;;  %v2718_v49 = vunpack.i.h.bf16 %v3309_v30 }
  0x92   :  { %v2044_v1 = vsel %vm2034_vm3, %v2031_v59, %v2717_v56 }
  0x93   :  { %v3313_v32 = vpop.permute.xlu1 %2720 }
  0x94   :  { %v3315_v33 = vpop.permute.xlu0 %2725 }
  0x97   :  { %v3317_v34 = vpop.permute.xlu1 %2730 }
  0x98   :  { %4246 = vst [vmem:[#allocation6_spill] sm:$0xff] %v3317_v34  ;;  %v3319_v35 = vpop.permute.xlu0 %2740 }
  0x9b   :  { %v3321_v36 = vpop.permute.xlu1 %2735 }
  0x9c   :  { %4247 = vst [vmem:[#allocation7_spill] sm:$0xff] %v3321_v36  ;;  %v3323_v37 = vpop.permute.xlu0 %2745 }
  0x9f   :  { %v3325_v38 = vpop.permute.xlu1 %2750 }
  0xa0   :  { %4248 = vst [vmem:[#allocation8_spill] sm:$0xff] %v3325_v38  ;;  %v3327_v39 = vpop.permute.xlu0 %2755  ;;  %v2753_v3 = vunpack.i.h.bf16 %v3325_v38 }
  0xa2   :  { %v2056_v13 = vsel %vm2047_vm4, %v2043_v7, %v2753_v3 }
  0xa3   :  { %v3329_v40 = vpop.permute.xlu1 %2760 }
  0xa4   :  { %v3331_v41 = vpop.permute.xlu0 %2765 }
  0xa5   :  { %4249 = vst [vmem:[#allocation9_spill] sm:$0xff] %v3331_v41 }
  0xa7   :  { %v3333_v42 = vpop.permute.xlu1 %2770 }
  0xa8   :  { %v3335_v43 = vpop.permute.xlu0 %2775 }
  0xa9   :  { %4250 = vst [vmem:[#allocation10_spill] sm:$0xff] %v3335_v43 }
  0xab   :  { %v3337_v44 = vpop.permute.xlu1 %2780 }
  0xac   :  { %v3339_v45 = vpop.permute.xlu0 %2790 }
  0xad   :  { %v2792_v63 = vunpack.i.l.bf16 %v3339_v45 }
  0xaf   :  { %v3341_v46 = vpop.permute.xlu1 %2785  ;;  %v2057_v8 = vsel %vm2047_vm4, %v2044_v1, %v2792_v63  ;;  %v2667_v63 = vunpack.i.l.bf16 %v3291_v19 }
  0xb0   :  { %4251 = vst [vmem:[#allocation11_spill] sm:$0xff] %v3341_v46  ;;  %v3343_v47 = vpop.permute.xlu0 %2800  ;;  %v4284_v46 = vunpack.i.h.bf16 %v3329_v40 }
  0xb1   :  { %v2019_v19 = vsel %vm2008_vm1, 0.0, %v2667_v63 }
  0xb2   :  { %v2032_v26 = vsel %vm2021_vm2, %v2019_v19, %v2692_v9 }
  0xb3   :  { %v3345_v48 = vpop.permute.xlu1 %2795  ;;  %v2045_v63 = vsel %vm2034_vm3, %v2032_v26, %v2718_v49 }
  0xb4   :  { %v3347_v50 = vpop.permute.xlu0 %2805  ;;  %v2797_v10 = vunpack.i.l.bf16 %v3345_v48 }
  0xb6   :  { %v2069_v54 = vsel %vm4213_vm5, %v2056_v13, %v2797_v10  ;;  %v2046_v10 = vsel %vm2034_vm3, %v2033_v0, %v3311_v31 }
  0xb7   :  { %v3349_v53 = vpop.permute.xlu1 %2810 }
  0xb8   :  { %v3352_v55 = vpop.permute.xlu0 %2815  ;;  %v2812_v5 = vunpack.i.l.bf16 %v3349_v53 }
  0xb9   :  { %v2818_v51 = vunpack.i.h.bf16 %v3352_v55 }
  0xba   :  { %v2070_v20 = vsel %vm4213_vm5, %v2057_v8, %v2812_v5 }
  0xbb   :  { %v3357_v60 = vpop.permute.xlu1 %2825  ;;  %v2082_v1 = vsel %vm4225_vm6, %v2069_v54, %v2818_v51 }
  0xbc   :  { %4252 = vst [vmem:[#allocation12_spill] sm:$0xff] %v3357_v60  ;;  %v3359_v61 = vpop.permute.xlu0 %2820 }
  0xbf   :  { %v3365_v2 = vpop.permute.xlu1 %2835 }
  0xc0   :  { %v3369_v6 = vpop.permute.xlu0 %2830  ;;  %v2837_v62 = vunpack.i.l.bf16 %v3365_v2 }
  0xc1   :  { %v2833_v12 = vunpack.i.h.bf16 %v3369_v6 }
  0xc2   :  { %v2095_v13 = vsel %vm4224_vm7, %v2082_v1, %v2837_v62 }
  0xc3   :  { %v3375_v11 = vpop.permute.xlu1 %2840  ;;  %v2083_v57 = vsel %vm4225_vm6, %v2070_v20, %v2833_v12 }
  0xc4   :  { %4253 = vst [vmem:[#allocation13_spill] sm:$0xff] %v3375_v11  ;;  %v3380_v23 = vpop.permute.xlu0 %2845 }
  0xc5   :  { %4254 = vst [vmem:[#allocation14_spill] sm:$0xff] %v3380_v23 }
  0xc7   :  { %v3386_v56 = vpop.permute.xlu1 %2850 }
  0xc8   :  { %v2852_v58 = vunpack.i.l.bf16 %v3386_v56  ;;  %v3390_v59 = vpop.permute.xlu0 %2855 }
  0xc9   :  { %v2857_v7 = vunpack.i.l.bf16 %v3390_v59 }
  0xca   :  { %v2096_v3 = vsel %vm4224_vm7, %v2083_v57, %v2852_v58  ;;  %v2793_v58 = vunpack.i.h.bf16 %v3339_v45 }
  0xcb   :  { %v3397_v5 = vpop.permute.xlu1 %2860  ;;  %v2108_v54 = vsel %vm4223_vm8, %v2095_v13, %v2857_v7 }
  0xcc   :  { %4255 = vst [vmem:[#allocation15_spill] sm:$0xff] %v3397_v5  ;;  %v2866_v8 = vpop.permute.xlu0 %2865  ;;  %v2058_v19 = vsel %vm2047_vm4, %v2045_v63, %v2793_v58 }
  0xcd   :  { %v2868_v12 = vunpack.i.h.bf16 %v2866_v8  ;;  %v2867_v45 = vunpack.i.l.bf16 %v2866_v8 }
  0xcf   :  { %v1467_v20 = vpop.permute.xlu1 %1466 }
  0xd0   :  { %v2059_v51 = vsel %vm2047_vm4, %v2046_v10, %v1467_v20  ;;  %v3407_v52 = vpop.permute.xlu0 %2875 }
  0xd1   :  { %v2878_v31 = vunpack.i.h.bf16 %v3407_v52  ;;  %v3413_v57 = vsel %vm4213_vm5, %v2059_v51, %v2868_v12 }
  0xd3   :  { %v3416_v62 = vpop.permute.xlu1 %2870  ;;  %v3419_v30 = vsel %vm2112_vm9, %v2108_v54, %v2878_v31 }
  0xd4   :  { %4256 = vst [vmem:[#allocation16_spill] sm:$0xff] %v3419_v30  ;;  %v2872_v0 = vunpack.i.l.bf16 %v3416_v62  ;;  %v3423_v1 = vpop.permute.xlu0 %2890 }
  0xd5   :  { %v2893_v9 = vunpack.i.h.bf16 %v3423_v1 }
  0xd6   :  { %v2109_v12 = vsel %vm4223_vm8, %v2096_v3, %v2872_v0  ;;  %v2071_v3 = vsel %vm4213_vm5, %v2058_v19, %v2867_v45 }
  0xd7   :  { %v2530_v7 = vpop.f32.mrb[0].mxu0  ;;  %v3428_v54 = vpop.permute.xlu1 %2880  ;;  %v3431_v49 = vsel %vm2112_vm9, %v2109_v12, %v2893_v9 }
  0xd8   :  { %v195_v10 = vrot.slane %v2530_v7, 6  ;;  %v132_v13 = vpop.f32.mrb[1].mxu0  ;;  %4257 = vst [vmem:[#allocation17_spill] sm:$0xff] %v3428_v54  ;;  %v199_v8 = vrot.slane %v2530_v7, 4 }
  0xd9   :  { %v194_v20 = vrot.slane %v132_v13, 6  ;;  %v2588_v51 = vpack.c.bf16 %v2530_v7, %v132_v13  ;;  %220 = vperm.xlu0 %2904, %v132_v13  }
  0xdb   :  { %v2533_v26 = vpop.f32.mrb[2].mxu0  ;;  %2589 = vmatprep.subr.bf16.mxu0 %v2588_v51  ;;  %2612 = vmatprep.subr.bf16.mxu1 %v2588_v51  ;;  %v196_v31 = vsel %vm193_vm10, %v194_v20, %v195_v10  ;;  %v3436_v9 = vpop.permute.xlu1 %2885 }
  0xdc   :  { %2591 = vmatpush3.bf16.msra.mxu0 %v2588_v51  ;;  %2618 = vmatpush3.bf16.msra.mxu1 %v2588_v51  ;;  %v142_v4 = vpop.f32.mrb[3].mxu0  ;;  %v2888_v12 = vunpack.i.h.bf16 %v3436_v9 }
  0xdd   :  { %208 = vperm.xlu1 %2907, %v196_v31   ;;  %v200_v58 = vrot.slane %v142_v4, 4  ;;  %v202_v63 = vrot.slane %v142_v4, 2  ;;  %v2592_v0 = vpack.c.bf16 %v2533_v26, %v142_v4  ;;  %2905 = vset.pattern.permute.xlu0 %v3101_v15 }
  0xde   :  { %204 = vperm.xlu0 %2905, %v132_v13   ;;  %v3441_v7 = vsel %vm4225_vm6, %v2071_v3, %v2888_v12  ;;  %v3102_v3 = vmov 11  }
  0xdf   :  { %v201_v10 = vsel %vm198_vm11, %v199_v8, %v200_v58  ;;  %v2536_v20 = vpop.f32.mrb[4].mxu0  ;;  %2593 = vmatprep.subr.bf16.mxu0 %v2592_v0  ;;  %2613 = vmatprep.subr.bf16.mxu1 %v2592_v0 }
  0xe0   :  { %v152_v51 = vpop.f32.mrb[5].mxu0  ;;  %2595 = vmatpush3.bf16.msra.mxu0 %v2592_v0  ;;  %2619 = vmatpush3.bf16.msra.mxu1 %v2592_v0 }
  0xe1   :  { %216 = vperm.xlu1 %2907, %v202_v63   ;;  %v2596_v4 = vpack.c.bf16 %v2536_v20, %v152_v51  ;;  %v3103_v51 = vmov 9  }
  0xe2   :  { %2906 = vset.pattern.permute.xlu0 %v3100_v14 }
  0xe3   :  { %223 = vperm.xlu0 %2906, %v196_v31   ;;  %v2539_v15 = vpop.f32.mrb[6].mxu0  ;;  %2597 = vmatprep.subr.bf16.mxu0 %v2596_v4 }
  0xe4   :  { %v162_v13 = vpop.f32.mrb[7].mxu0  ;;  %2614 = vmatprep.subr.bf16.mxu1 %v2596_v4  ;;  %2599 = vmatpush3.bf16.msra.mxu0 %v2596_v4 }
  0xe5   :  { %212 = vperm.xlu1 %2907, %v201_v10   ;;  %v2600_v45 = vpack.c.bf16 %v2539_v15, %v162_v13  ;;  %2620 = vmatpush3.bf16.msra.mxu1 %v2596_v4 }
  0xe7   :  { %229 = vperm.xlu0 %2906, %v202_v63   ;;  %v2542_v19 = vpop.f32.mrb[8].mxu0  ;;  %2601 = vmatprep.subr.bf16.mxu0 %v2600_v45 }
  0xe8   :  { %v172_v26 = vpop.f32.mrb[9].mxu0  ;;  %2615 = vmatprep.subr.bf16.mxu1 %v2600_v45  ;;  %2603 = vmatpush3.bf16.msra.mxu0 %v2600_v45  ;;  %v356_v14 = vrot.slane %v2542_v19, 6 }
  0xe9   :  { %2908 = vset.pattern.permute.xlu1 %v3102_v3  ;;  %v2604_v8 = vpack.c.bf16 %v2542_v19, %v172_v26  ;;  %2621 = vmatpush3.bf16.msra.mxu1 %v2600_v45  ;;  %v231_v45 = vlaneseq }
  0xea   :  { %381 = vperm.xlu1 %2908, %v2542_v19  }
  0xeb   :  { %226 = vperm.xlu0 %2906, %v201_v10   ;;  %v2545_v31 = vpop.f32.mrb[10].mxu0  ;;  %2605 = vmatprep.subr.bf16.mxu0 %v2604_v8  ;;  %v4258_v10 = vmov 0.0   ;;  %v232_v26 = vand.u32 127, %v231_v45 }
  0xec   :  { %v361_v58 = vrot.slane %v2545_v31, 4  ;;  %v182_v0 = vpop.f32.mrb[11].mxu0  ;;  %2616 = vmatprep.subr.bf16.mxu1 %v2604_v8  ;;  %2607 = vmatpush3.bf16.msra.mxu0 %v2604_v8  ;;  %v363_v4 = vrot.slane %v2545_v31, 2 }
  0xed   :  { %v357_v12 = vrot.slane %v182_v0, 6  ;;  %v360_v63 = vrot.slane %v182_v0, 4  ;;  %v2608_v20 = vpack.c.bf16 %v2545_v31, %v182_v0  ;;  %2622 = vmatpush3.bf16.msra.mxu1 %v2604_v8  ;;  %v3450_v8 = vshrl.u32 %v231_v45, 7 }
  0xee   :  { %2909 = vset.pattern.permute.xlu1 %v3103_v51 }
  0xef   :  { %365 = vperm.xlu1 %2909, %v2542_v19   ;;  %v358_v15 = vsel %vm193_vm10, %v356_v14, %v357_v12  ;;  %v362_v13 = vsel %vm198_vm11, %v360_v63, %v361_v58  ;;  %2910 = vset.pattern.permute.xlu0 %v3102_v3  ;;  %v3448_v19 = vpop.permute.xlu0 %2895  ;;  %v3452_v14 = vpop.permute.xlu1 %2900  ;;  %v3455_v31 = vsub.s32 %v232_v26, %v3450_v8  ;;  %v14_v63 = vld [vmem:[%s4202_s1] sm:$0x3f] }
  0xf0   :  { %390 = vperm.xlu0 %2910, %v363_v4   ;;  %2609 = vmatprep.subr.bf16.mxu0 %v2608_v20  ;;  %4259 = vst [vmem:[#allocation18_spill] sm:$0xff] %v3448_v19  ;;  %vm289_vm13 = vcmp.gt.f32.partialorder %v14_v63, 0.0 }
  0xf1   :  { %2617 = vmatprep.subr.bf16.mxu1 %v2608_v20  ;;  %2611 = vmatpush3.bf16.msra.mxu0 %v2608_v20 }
  0xf2   :  { %2623 = vmatpush3.bf16.msra.mxu1 %v2608_v20 }
  0xf3   :  { %377 = vperm.xlu1 %2909, %v363_v4  }
  0xf4   :  { %387 = vperm.xlu0 %2910, %v362_v13  }
  0xf7   :  { %2911 = vset.pattern.permute.xlu1 %v3102_v3 }
  0xf8   :  { %384 = vperm.xlu1 %2911, %v358_v15  }
  0xfc   :  { %2912 = vset.pattern.permute.xlu1 %v3103_v51 }
  0xfd   :  { %369 = vperm.xlu1 %2912, %v358_v15  }
 0x101   :  { %373 = vperm.xlu1 %2912, %v362_v13  }
 0x105   :  { %2919 = vrot.lane.b32.xlu1 %v4258_v10, %s3094_s18 }
 0x158   :  { %v221_v58 = vpop.permute.xlu0 %220 }
 0x159   :  { %v236_v3 = vrot.slane %v221_v58, %v3455_v31 }
 0x15c   :  { %v209_v0 = vpop.permute.xlu1 %208 }
 0x15d   :  { %v205_v12 = vpop.permute.xlu0 %204 }
 0x15e   :  { %v273_v20 = vadd.f32 %v236_v3, %v205_v12 }
 0x160   :  { %v281_v51 = vmul.f32 0.2, %v273_v20  ;;  %v217_v4 = vpop.permute.xlu1 %216  ;;  %vm277_vm12 = vcmp.gt.f32.partialorder %v273_v20, 0.0 }
 0x162   :  { %v224_v15 = vpop.permute.xlu0 %223  ;;  %v285_v13 = vsel %vm277_vm12, %v273_v20, %v281_v51 }
 0x163   :  { %v240_v45 = vrot.slane %v224_v15, %v3455_v31  ;;  %v3463_v26 = vsel %vm289_vm13, %v285_v13, -9e+15 }
 0x164   :  { %v297_v58 = vsel %vm296_vm14, %v3463_v26, -inf  ;;  %v213_v38 = vpop.permute.xlu1 %212 }
 0x165   :  { %v274_v30 = vadd.f32 %v240_v45, %v209_v0  ;;  %298 = vmax.xlane.f32.xlu0 %v297_v58 }
 0x166   :  { %v230_v29 = vpop.permute.xlu0 %229 }
 0x167   :  { %v248_v3 = vrot.slane %v230_v29, %v3455_v31  ;;  %vm278_vm15 = vcmp.gt.f32.partialorder %v274_v30, 0.0  ;;  %v282_v12 = vmul.f32 0.2, %v274_v30 }
 0x169   :  { %v276_v19 = vadd.f32 %v248_v3, %v217_v4  ;;  %v382_v54 = vpop.permute.xlu1 %381  ;;  %v286_v5 = vsel %vm278_vm15, %v274_v30, %v282_v12  ;;  %v15_v30 = vld [vmem:[%s4202_s1 + $0x8] sm:$0x3f] }
 0x16a   :  { %v227_v20 = vpop.permute.xlu0 %226  ;;  %v395_v51 = vrot.slane %v382_v54, %v3455_v31  ;;  %v3470_v15 = vsel %vm289_vm13, %v286_v5, -9e+15  ;;  %vm444_vm0 = vcmp.gt.f32.partialorder %v15_v30, 0.0 }
 0x16b   :  { %v244_v13 = vrot.slane %v227_v20, %v3455_v31  ;;  %v300_v0 = vsel %vm296_vm14, %v3470_v15, -inf  ;;  %vm280_vm12 = vcmp.gt.f32.partialorder %v276_v19, 0.0  ;;  %v284_v45 = vmul.f32 0.2, %v276_v19 }
 0x16c   :  { %301 = vmax.xlane.f32.xlu0 %v300_v0 }
 0x16d   :  { %v275_v29 = vadd.f32 %v244_v13, %v213_v38  ;;  %v288_v58 = vsel %vm280_vm12, %v276_v19, %v284_v45 }
 0x16e   :  { %v366_v11 = vpop.permute.xlu1 %365  ;;  %v3476_v4 = vsel %vm289_vm13, %v288_v58, -9e+15 }
 0x16f   :  { %v428_v5 = vadd.f32 %v395_v51, %v366_v11  ;;  %v306_v54 = vsel %vm296_vm14, %v3476_v4, -inf  ;;  %vm279_vm15 = vcmp.gt.f32.partialorder %v275_v29, 0.0  ;;  %v283_v3 = vmul.f32 0.2, %v275_v29  ;;  %v391_v12 = vpop.permute.xlu0 %390 }
 0x170   :  { %307 = vmax.xlane.f32.xlu0 %v306_v54  ;;  %v407_v20 = vrot.slane %v391_v12, %v3455_v31 }
 0x171   :  { %v436_v38 = vmul.f32 0.2, %v428_v5  ;;  %v287_v19 = vsel %vm279_vm15, %v275_v29, %v283_v3  ;;  %vm432_vm12 = vcmp.gt.f32.partialorder %v428_v5, 0.0 }
 0x172   :  { %v378_v13 = vpop.permute.xlu1 %377  ;;  %v3485_v0 = vsel %vm289_vm13, %v287_v19, -9e+15 }
 0x173   :  { %v303_v11 = vsel %vm296_vm14, %v3485_v0, -inf  ;;  %v431_v51 = vadd.f32 %v407_v20, %v378_v13  ;;  %v440_v45 = vsel %vm432_vm12, %v428_v5, %v436_v38  ;;  %v388_v3 = vpop.permute.xlu0 %387 }
 0x174   :  { %304 = vmax.xlane.f32.xlu1 %v303_v11  ;;  %v3490_v58 = vsel %vm444_vm0, %v440_v45, -9e+15  ;;  %v403_v17 = vrot.slane %v388_v3, %v3455_v31 }
 0x175   :  { %vm435_vm5 = vcmp.gt.f32.partialorder %v431_v51, 0.0  ;;  %v439_v54 = vmul.f32 0.2, %v431_v51 }
 0x177   :  { %v385_v12 = vpop.permute.xlu1 %384  ;;  %v443_v41 = vsel %vm435_vm5, %v431_v51, %v439_v54  ;;  %vm2138_vm5 = vcmask 539648  }
 0x178   :  { %v3493_v29 = vsel %vm444_vm0, %v443_v41, -9e+15  ;;  %v399_v63 = vrot.slane %v385_v12, %v3455_v31 }
 0x17c   :  { %v370_v19 = vpop.permute.xlu1 %369 }
 0x17d   :  { %v429_v24 = vadd.f32 %v399_v63, %v370_v19 }
 0x17f   :  { %v437_v20 = vmul.f32 0.2, %v429_v24  ;;  %vm433_vm13 = vcmp.gt.f32.partialorder %v429_v24, 0.0 }
 0x180   :  { %v374_v5 = vpop.permute.xlu1 %373 }
 0x181   :  { %v430_v38 = vadd.f32 %v403_v17, %v374_v5  ;;  %v441_v13 = vsel %vm433_vm13, %v429_v24, %v437_v20  ;;  %v451_v17 = vsel %vm296_vm14, %v3490_v58, -inf  ;;  %v460_v24 = vsel %vm296_vm14, %v3493_v29, -inf }
 0x182   :  { %v3498_v11 = vsel %vm444_vm0, %v441_v13, -9e+15  ;;  %vm568_vm13 = vcmp.ge.s32.totalorder %v3450_v8, 6 }
 0x183   :  { %vm434_vm15 = vcmp.gt.f32.partialorder %v430_v38, 0.0  ;;  %v438_v51 = vmul.f32 0.2, %v430_v38  ;;  %v454_v31 = vsel %vm296_vm14, %v3498_v11, -inf }
 0x184   :  { %v3535_v5 = vpop.permute.xlu1 %2919 }
 0x185   :  { %1610 = vrot.lane.b32.xlu1 %v4258_v10, %s3089_s13  ;;  %v442_v41 = vsel %vm434_vm15, %v430_v38, %v438_v51 }
 0x186   :  { %2914 = vrot.lane.b32.xlu0 %v4258_v10, %s3089_s13  ;;  %v3505_v45 = vsel %vm444_vm0, %v442_v41, -9e+15  ;;  %vm2125_vm0 = vcmask 490496  }
 0x187   :  { %v457_v30 = vsel %vm296_vm14, %v3505_v45, -inf }
 0x189   :  { %2939 = vrot.lane.b32.xlu1 %v4258_v10, %s3095_s19 }
 0x18d   :  { %1658 = vrot.lane.b32.xlu1 %v4258_v10, %s3091_s15 }
 0x191   :  { %2954 = vrot.lane.b32.xlu1 %v4258_v10, %s3096_s2 }
 0x1a5   :  { %452 = vmax.xlane.f32.xlu0 %v451_v17  ;;  %v2903_v17 = vunpack.i.h.bf16 %v3452_v14 }
 0x1a9   :  { %461 = vmax.xlane.f32.xlu0 %v460_v24 }
 0x1b5   :  { %455 = vmax.xlane.f32.xlu1 %v454_v31 }
 0x1b9   :  { %458 = vmax.xlane.f32.xlu1 %v457_v30 }
 0x1bf   :  { %2924 = vrot.lane.b32.xlu0 %v4258_v10, %s3095_s19 }
 0x1c3   :  { %2929 = vrot.lane.b32.xlu0 %v4258_v10, %s3099_s23 }
 0x1c7   :  { %2934 = vrot.lane.b32.xlu0 %v4258_v10, %s3091_s15 }
 0x1ca   :  { %2959 = vrot.lane.b32.xlu1 %v4258_v10, %s3097_s21 }
 0x1cb   :  { %2944 = vrot.lane.b32.xlu0 %v4258_v10, %s3096_s2 }
 0x1cf   :  { %2949 = vrot.lane.b32.xlu0 %v4258_v10, %s3092_s16 }
 0x1f2   :  { %v299_v54 = vpop.xlane.xlu0 %298 }
 0x1f3   :  { %v309_v12 = vsub.f32 %v3463_v26, %v299_v54 }
 0x1f5   :  { %v313_v63 = vmul.f32 1.442695, %v309_v12  ;;  %v2085_v12 = vsel %vm4225_vm6, %v3413_v57, %v2903_v17 }
 0x1f7   :  { %3028 = vpow2.f32 %v313_v63 }
 0x1f9   :  { %v302_v3 = vpop.xlane.xlu0 %301 }
 0x1fa   :  { %v310_v19 = vsub.f32 %v3470_v15, %v302_v3 }
 0x1fc   :  { %v315_v20 = vmul.f32 1.442695, %v310_v19  ;;  %v2922_v19 = vunpack.i.h.bf16 %v3535_v5 }
 0x1fd   :  { %v308_v38 = vpop.xlane.xlu0 %307 }
 0x1fe   :  { %3030 = vpow2.f32 %v315_v20  ;;  %v312_v13 = vsub.f32 %v3476_v4, %v308_v38  ;;  %v2135_v57 = vsel %vm2125_vm0, %v3431_v49, %v2922_v19 }
 0x200   :  { %v319_v51 = vmul.f32 1.442695, %v312_v13 }
 0x201   :  { %v3538_v41 = vpop.eup %3028  ;;  %v3541_v24 = vpop.permute.xlu0 %2914 }
 0x202   :  { %v305_v26 = vpop.xlane.xlu1 %304  ;;  %3032 = vpow2.f32 %v319_v51  ;;  %v2916_v31 = vunpack.i.l.bf16 %v3541_v24  ;;  %v321_v30 = vsel %vm296_vm14, %v3538_v41, 0.0 }
 0x203   :  { %v311_v15 = vsub.f32 %v3485_v0, %v305_v26  ;;  %322 = vadd.xlane.f32.xlu1 %v321_v30 }
 0x204   :  { %v2097_v54 = vsel %vm4224_vm7, %v3441_v7, %v2916_v31 }
 0x205   :  { %v317_v4 = vmul.f32 1.442695, %v311_v15 }
 0x206   :  { %v1611_v63 = vpop.permute.xlu1 %1610 }
 0x207   :  { %3034 = vpow2.f32 %v317_v4  ;;  %v2098_v3 = vsel %vm4224_vm7, %v2085_v12, %v1611_v63 }
 0x208   :  { %v3553_v20 = vpop.eup %3030 }
 0x209   :  { %v324_v38 = vsel %vm296_vm14, %v3553_v20, 0.0 }
 0x20a   :  { %v3555_v0 = vpop.permute.xlu1 %2939  ;;  %325 = vadd.xlane.f32.xlu0 %v324_v38 }
 0x20b   :  { %v2941_v7 = vunpack.i.l.bf16 %v3555_v0 }
 0x20c   :  { %v3562_v13 = vpop.eup %3032 }
 0x20d   :  { %v3565_v51 = vsel %vm2138_vm5, %v2135_v57, %v2941_v7  ;;  %v330_v26 = vsel %vm296_vm14, %v3562_v13, 0.0 }
 0x20e   :  { %4260 = vst [vmem:[#allocation19_spill] sm:$0xff] %v3565_v51  ;;  %v1659_v17 = vpop.permute.xlu1 %1658  ;;  %331 = vadd.xlane.f32.xlu0 %v330_v26 }
 0x20f   :  { %v3570_v31 = vsel %vm4223_vm8, %v2098_v3, %v1659_v17 }
 0x211   :  { %v3572_v15 = vpop.eup %3034 }
 0x212   :  { %v327_v30 = vsel %vm296_vm14, %v3572_v15, 0.0  ;;  %v3580_v3 = vpop.permute.xlu1 %2954 }
 0x213   :  { %328 = vadd.xlane.f32.xlu1 %v327_v30 }
 0x232   :  { %v453_v49 = vpop.xlane.xlu0 %452 }
 0x233   :  { %v463_v4 = vsub.f32 %v3490_v58, %v453_v49 }
 0x235   :  { %v467_v12 = vmul.f32 1.442695, %v463_v4 }
 0x236   :  { %v462_v63 = vpop.xlane.xlu0 %461 }
 0x237   :  { %3036 = vpow2.f32 %v467_v12  ;;  %v466_v19 = vsub.f32 %v3493_v29, %v462_v63 }
 0x239   :  { %v473_v38 = vmul.f32 1.442695, %v466_v19 }
 0x23a   :  { %v3578_v7 = vpop.permute.xlu0 %2924 }
 0x23b   :  { %3038 = vpow2.f32 %v473_v38 }
 0x23e   :  { %v3582_v57 = vpop.permute.xlu0 %2929 }
 0x23f   :  { %4261 = vst [vmem:[#allocation20_spill] sm:$0xff] %v3582_v57 }
 0x241   :  { %v3584_v17 = vpop.eup %3036 }
 0x242   :  { %v3586_v26 = vpop.permute.xlu0 %2934  ;;  %v456_v30 = vpop.xlane.xlu1 %455  ;;  %v475_v58 = vsel %vm296_vm14, %v3584_v17, 0.0 }
 0x243   :  { %4262 = vst [vmem:[#allocation21_spill] sm:$0xff] %v3586_v26  ;;  %v2936_v49 = vunpack.i.l.bf16 %v3586_v26  ;;  %v464_v29 = vsub.f32 %v3498_v11, %v456_v30  ;;  %476 = vadd.xlane.f32.xlu1 %v475_v58 }
 0x245   :  { %v3592_v4 = vpop.eup %3038  ;;  %v3595_v12 = vsel %vm4223_vm8, %v2097_v54, %v2936_v49  ;;  %v469_v63 = vmul.f32 1.442695, %v464_v29 }
 0x246   :  { %v484_v19 = vsel %vm296_vm14, %v3592_v4, 0.0  ;;  %v459_v11 = vpop.xlane.xlu1 %458 }
 0x247   :  { %3040 = vpow2.f32 %v469_v63  ;;  %485 = vadd.xlane.f32.xlu0 %v484_v19  ;;  %v465_v30 = vsub.f32 %v3505_v45, %v459_v11  ;;  %v3628_v45 = vpop.permute.xlu0 %2944 }
 0x248   :  { %4263 = vst [vmem:[#allocation22_spill] sm:$0xff] %v3628_v45 }
 0x249   :  { %v471_v54 = vmul.f32 1.442695, %v465_v30 }
 0x24a   :  { %v3632_v49 = vpop.permute.xlu1 %2959 }
 0x24b   :  { %3042 = vpow2.f32 %v471_v54  ;;  %4264 = vst [vmem:[#allocation23_spill] sm:$0xff] %v3632_v49  ;;  %v3636_v29 = vpop.permute.xlu0 %2949 }
 0x251   :  { %v3599_v38 = vpop.eup %3040 }
 0x252   :  { %v478_v51 = vsel %vm296_vm14, %v3599_v38, 0.0 }
 0x253   :  { %479 = vadd.xlane.f32.xlu0 %v478_v51 }
 0x254   :  { %2969 = vrot.lane.b32.xlu1 %v4258_v10, %s3094_s18 }
 0x255   :  { %v3612_v58 = vpop.eup %3042 }
 0x256   :  { %v481_v51 = vsel %vm296_vm14, %v3612_v58, 0.0  ;;  %vm350_vm14 = vcmask 1045504  }
 0x269   :  { %2964 = vrot.lane.b32.xlu0 %v4258_v10, %s3092_s16 }
 0x26d   :  { %2974 = vrot.lane.b32.xlu0 %v4258_v10, %s3097_s21 }
 0x271   :  { %2979 = vrot.lane.b32.xlu0 %v4258_v10, %s3098_s22 }
 0x275   :  { %2989 = vrot.lane.b32.xlu0 %v4258_v10, %s3095_s19 }
 0x278   :  { %482 = vadd.xlane.f32.xlu1 %v481_v51  ;;  %v511_v51 = vadd.s32 24, %v3450_v8 }
 0x279   :  { %2999 = vrot.lane.b32.xlu0 %v4258_v10, %s3099_s23 }
 0x27a   :  { %vm727_vm12 = vcmp.lt.s32.totalorder %v511_v51, 30  ;;  %vm763_vm15 = vcmp.ge.s32.totalorder %v511_v51, 30 }
 0x27d   :  { %3004 = vrot.lane.b32.xlu0 %v4258_v10, %s3096_s2 }
 0x281   :  { %1850 = vrot.lane.b32.xlu0 %v4258_v10, %s3096_s2 }
 0x285   :  { %3014 = vrot.lane.b32.xlu0 %v4258_v10, %s3097_s21 }
 0x289   :  { %2984 = vrot.lane.b32.xlu1 %v4258_v10, %s3094_s18 }
 0x28d   :  { %2994 = vrot.lane.b32.xlu1 %v4258_v10, %s3098_s22 }
 0x290   :  { %v323_v63 = vpop.xlane.xlu1 %322 }
 0x291   :  { %1802 = vrot.lane.b32.xlu1 %v4258_v10, %s3095_s19  ;;  %3044 = vrcp.f32 %v323_v63 }
 0x295   :  { %3009 = vrot.lane.b32.xlu1 %v4258_v10, %s3099_s23 }
 0x297   :  { %v326_v19 = vpop.xlane.xlu0 %325 }
 0x298   :  { %3046 = vrcp.f32 %v326_v19 }
 0x299   :  { %3019 = vrot.lane.b32.xlu1 %v4258_v10, %s3098_s22 }
 0x29b   :  { %v332_v11 = vpop.xlane.xlu0 %331  ;;  %v3045_v54 = vpop.eup %3044 }
 0x29c   :  { %3048 = vrcp.f32 %v332_v11  ;;  %v334_v60 = vmul.f32 %v3045_v54, %v3538_v41  ;;  %v509_v41 = vadd.s32 8, %v3450_v8 }
 0x29e   :  { %vm617_vm7 = vcmp.ge.s32.totalorder %v509_v41, 12 }
 0x2a0   :  { %v329_v30 = vpop.xlane.xlu1 %328 }
 0x2a1   :  { %3050 = vrcp.f32 %v329_v30 }
 0x2a2   :  { %v3047_v57 = vpop.eup %3046 }
 0x2a3   :  { %v336_v23 = vmul.f32 %v3047_v57, %v3553_v20 }
 0x2a5   :  { %v342_v49 = vrot.slane %v336_v23, 2  ;;  %v510_v23 = vadd.s32 16, %v3450_v8 }
 0x2a6   :  { %v3049_v63 = vpop.eup %3048 }
 0x2a7   :  { %v3647_v19 = vsel %vm350_vm14, %v334_v60, %v342_v49  ;;  %v340_v45 = vmul.f32 %v3049_v63, %v3562_v13  ;;  %vm666_vm8 = vcmp.ge.s32.totalorder %v510_v23, 18 }
 0x2a8   :  { %v751_v11 = vsel %vm727_vm12, %v3647_v19, 0.0  ;;  %v604_v30 = vsel %vm568_vm13, %v3647_v19, 0.0  ;;  %v799_v60 = vsel %vm763_vm15, %v3647_v19, 0.0  ;;  %vm630_vm12 = vcmp.lt.s32.totalorder %v510_v23, 18 }
 0x2a9   :  { %1450 = vrot.lane.b32.xlu0 %v751_v11, %s3088_s0  ;;  %1300 = vrot.lane.b32.xlu1 %v604_v30, %s3085_s20  ;;  %v348_v26 = vrot.slane %v340_v45, 6  ;;  %vm581_vm13 = vcmp.lt.s32.totalorder %v509_v41, 12  ;;  %v512_v30 = vadd.s32 32, %v3450_v8 }
 0x2ab   :  { %v3051_v20 = vpop.eup %3050  ;;  %vm776_vm6 = vcmp.lt.s32.totalorder %v512_v30, 36 }
 0x2ac   :  { %v338_v57 = vmul.f32 %v3051_v20, %v3572_v15  ;;  %v513_v15 = vadd.s32 40, %v3450_v8 }
 0x2ad   :  { %1498 = vrot.lane.b32.xlu0 %v799_v60, %s3090_s14  ;;  %v2952_v60 = vunpack.i.h.bf16 %v3636_v29 }
 0x2ae   :  { %v345_v54 = vrot.slane %v338_v57, 4  ;;  %vm825_vm15 = vcmp.lt.s32.totalorder %v513_v15, 42 }
 0x2b0   :  { %v353_v13 = vsel %vm193_vm10, %v345_v54, %v348_v26  ;;  %v352_v63 = vsel %vm198_vm11, %v342_v49, %v345_v54 }
 0x2b1   :  { %v654_v51 = vsel %vm630_vm12, %v353_v13, 0.0  ;;  %v605_v11 = vsel %vm581_vm13, %v352_v63, 0.0  ;;  %v702_v20 = vsel %vm666_vm8, %v353_v13, 0.0  ;;  %v653_v45 = vsel %vm617_vm7, %v352_v63, 0.0 }
 0x2b2   :  { %1352 = vrot.lane.b32.xlu1 %v654_v51, %s3086_s28  ;;  %1302 = vrot.lane.b32.xlu0 %v605_v11, %s3085_s20  ;;  %v849_v26 = vsel %vm825_vm15, %v353_v13, 0.0  ;;  %v800_v49 = vsel %vm776_vm6, %v352_v63, 0.0  ;;  %vm861_vm12 = vcmp.ge.s32.totalorder %v513_v15, 42  ;;  %vm812_vm13 = vcmp.ge.s32.totalorder %v512_v30, 36 }
 0x2b3   :  { %v897_v23 = vsel %vm861_vm12, %v353_v13, 0.0  ;;  %v848_v41 = vsel %vm812_vm13, %v352_v63, 0.0  ;;  %v2123_v11 = vsel %vm2112_vm9, %v3595_v12, %v2952_v60  ;;  %vm4239_vm8 = vcmask 588800  }
 0x2b4   :  { %vm4236_vm15 = vcmask 637952  }
 0x2b6   :  { %1400 = vrot.lane.b32.xlu1 %v702_v20, %s3087_s10  ;;  %1350 = vrot.lane.b32.xlu0 %v653_v45, %s3086_s28 }
 0x2ba   :  { %1550 = vrot.lane.b32.xlu1 %v849_v26, %s3093_s17  ;;  %1500 = vrot.lane.b32.xlu0 %v800_v49, %s3090_s14 }
 0x2be   :  { %1598 = vrot.lane.b32.xlu1 %v897_v23, %s3089_s13  ;;  %1548 = vrot.lane.b32.xlu0 %v848_v41, %s3093_s17  ;;  %v514_v23 = vadd.s32 48, %v3450_v8 }
 0x2c0   :  { %vm958_vm6 = vcmp.ge.s32.totalorder %v514_v23, 54  ;;  %vm922_vm7 = vcmp.lt.s32.totalorder %v514_v23, 54 }
 0x2d0   :  { %v477_v57 = vpop.xlane.xlu1 %476 }
 0x2d1   :  { %3052 = vrcp.f32 %v477_v57 }
 0x2d4   :  { %v3672_v54 = vpop.permute.xlu1 %2969  ;;  %v486_v15 = vpop.xlane.xlu0 %485 }
 0x2d5   :  { %4265 = vst [vmem:[#allocation24_spill] sm:$0xff] %v3672_v54  ;;  %v2972_v51 = vunpack.i.h.bf16 %v3672_v54 }
 0x2d7   :  { %v2136_v20 = vsel %vm2125_vm0, %v2123_v11, %v2972_v51 }
 0x2db   :  { %v3053_v49 = vpop.eup %3052 }
 0x2dc   :  { %v488_v57 = vmul.f32 %v3053_v49, %v3584_v17 }
 0x2e0   :  { %v480_v13 = vpop.xlane.xlu0 %479 }
 0x2e1   :  { %3054 = vrcp.f32 %v480_v13 }
 0x2e2   :  { %3056 = vrcp.f32 %v486_v15 }
 0x2e4   :  { %v3678_v63 = vpop.permute.xlu0 %2964 }
 0x2e5   :  { %v2967_v30 = vunpack.i.h.bf16 %v3678_v63 }
 0x2e7   :  { %v2124_v45 = vsel %vm2112_vm9, %v3570_v31, %v2967_v30 }
 0x2e8   :  { %v3683_v26 = vpop.permute.xlu0 %2974 }
 0x2e9   :  { %4266 = vst [vmem:[#allocation25_spill] sm:$0xff] %v3683_v26  ;;  %v2652_v26 = vunpack.i.l.bf16 %v3289_v18 }
 0x2eb   :  { %v3055_v41 = vpop.eup %3054  ;;  %v2013_v54 = vsel %vm2008_vm1, 0.0, %v2652_v26  ;;  %v2702_v26 = vunpack.i.l.bf16 %v3303_v27 }
 0x2ec   :  { %v3687_v12 = vmul.f32 %v3055_v41, %v3599_v38  ;;  %v3689_v60 = vpop.permute.xlu0 %2979 }
 0x2ed   :  { %4267 = vst [vmem:[#allocation26_spill] sm:$0xff] %v3689_v60  ;;  %v2673_v60 = vunpack.i.h.bf16 %v3295_v22 }
 0x2ee   :  { %v4226_v51 = vrot.slane %v3687_v12, 2 }
 0x2f0   :  { %v3693_v11 = vpop.permute.xlu0 %2989  ;;  %v3698_v31 = vsel %vm350_vm14, %v488_v57, %v4226_v51  ;;  %v2653_v51 = vunpack.i.h.bf16 %v3289_v18  ;;  %v2647_v18 = vunpack.i.l.bf16 %v3285_v16  ;;  %vm4272_vm14 = vcmask 244736  }
 0x2f1   :  { %4268 = vst [vmem:[#allocation27_spill] sm:$0xff] %v3693_v11  ;;  %v2991_v13 = vunpack.i.l.bf16 %v3693_v11  ;;  %v994_v38 = vsel %vm958_vm6, %v3698_v31, 0.0  ;;  %v946_v30 = vsel %vm922_vm7, %v3698_v31, 0.0 }
 0x2f2   :  { %1696 = vrot.lane.b32.xlu1 %v994_v38, %s3092_s16  ;;  %1648 = vrot.lane.b32.xlu0 %v946_v30, %s3091_s15  ;;  %v2678_v38 = vunpack.i.h.bf16 %v3293_v21  ;;  %v2648_v30 = vunpack.i.h.bf16 %v3285_v16 }
 0x2f3   :  { %v2149_v17 = vsel %vm2138_vm5, %v2136_v20, %v2991_v13  ;;  %v2014_v20 = vsel %vm2008_vm1, 0.0, %v2653_v51  ;;  %v2677_v13 = vunpack.i.l.bf16 %v3293_v21  ;;  %v2732_v21 = vunpack.i.l.bf16 %v3317_v34 }
 0x2f4   :  { %v3706_v49 = vpop.permute.xlu0 %2999 }
 0x2f5   :  { %4269 = vst [vmem:[#allocation28_spill] sm:$0xff] %v3706_v49  ;;  %v2707_v49 = vunpack.i.l.bf16 %v3305_v28  ;;  %v2026_v51 = vsel %vm2021_vm2, %v2013_v54, %v2677_v13 }
 0x2f8   :  { %v3708_v23 = vpop.permute.xlu0 %3004 }
 0x2f9   :  { %4270 = vst [vmem:[#allocation29_spill] sm:$0xff] %v3708_v23  ;;  %v3006_v41 = vunpack.i.l.bf16 %v3708_v23 }
 0x2fb   :  { %v3712_v57 = vsel %vm4239_vm8, %v2149_v17, %v3006_v41  ;;  %v2027_v17 = vsel %vm2021_vm2, %v2014_v20, %v2678_v38  ;;  %v2012_v41 = vsel %vm2008_vm1, 0.0, %v2648_v30  ;;  %v2728_v38 = vunpack.i.h.bf16 %v3315_v33 }
 0x2fc   :  { %4271 = vst [vmem:[#allocation30_spill] sm:$0xff] %v3712_v57  ;;  %v2703_v57 = vunpack.i.h.bf16 %v3303_v27  ;;  %v1851_v28 = vpop.permute.xlu0 %1850  ;;  %v2040_v11 = vsel %vm2034_vm3, %v2027_v17, %v2707_v49  ;;  %v2025_v15 = vsel %vm2021_vm2, %v2012_v41, %v2673_v60  ;;  %v2737_v30 = vunpack.i.l.bf16 %v3321_v36 }
 0x2fd   :  { %v3737_v20 = vsel %vm2008_vm1, 0.0, %v2647_v18  ;;  %v2053_v49 = vsel %vm2047_vm4, %v2040_v11, %v2732_v21  ;;  %v3748_v36 = vsel %vm2034_vm3, %v2025_v15, %v2702_v26  ;;  %v3057_v15 = vpop.eup %3056  ;;  %v515_v11 = vadd.s32 56, %v3450_v8 }
 0x2fe   :  { %v2039_v54 = vsel %vm2034_vm3, %v2026_v51, %v2703_v57  ;;  %v3764_v26 = vsel %vm4272_vm14, %v2053_v49, %v2737_v30  ;;  %v516_v49 = vadd.s32 64, %v3450_v8 }
 0x2ff   :  { %v3754_v27 = vsel %vm2047_vm4, %v2039_v54, %v2728_v38  ;;  %v494_v54 = vmul.f32 %v3057_v15, %v3592_v4  ;;  %vm1007_vm12 = vcmp.ge.s32.totalorder %v515_v11, 60  ;;  %vm971_vm13 = vcmp.lt.s32.totalorder %v515_v11, 60  ;;  %v4277_v4 = vld [vmem:[#allocation23_spill] sm:$0xff] }
 0x300   :  { %v3761_v41 = vpop.permute.xlu0 %3014  ;;  %vm1020_vm6 = vcmp.lt.s32.totalorder %v516_v49, 66  ;;  %vm1056_vm7 = vcmp.ge.s32.totalorder %v516_v49, 66 }
 0x301   :  { %v502_v11 = vrot.slane %v494_v54, 6 }
 0x305   :  { %v483_v23 = vpop.xlane.xlu1 %482 }
 0x306   :  { %3058 = vrcp.f32 %v483_v23 }
 0x309   :  { %v3734_v16 = vpop.permute.xlu1 %2984 }
 0x30a   :  { %v2987_v13 = vunpack.i.h.bf16 %v3734_v16 }
 0x30c   :  { %v2137_v51 = vsel %vm2125_vm0, %v2124_v45, %v2987_v13  ;;  %v3017_v45 = vunpack.i.h.bf16 %v3761_v41 }
 0x30d   :  { %v3759_v60 = vpop.permute.xlu1 %2994 }
 0x310   :  { %v3059_v18 = vpop.eup %3058 }
 0x311   :  { %v492_v13 = vmul.f32 %v3059_v18, %v3612_v58  ;;  %v1803_v17 = vpop.permute.xlu1 %1802  ;;  %v4276_v58 = vld [vmem:[#allocation22_spill] sm:$0xff] }
 0x312   :  { %v2150_v30 = vsel %vm2138_vm5, %v2137_v51, %v1803_v17 }
 0x313   :  { %v2163_v57 = vsel %vm4239_vm8, %v2150_v30, %v1851_v28  ;;  %v499_v34 = vrot.slane %v492_v13, 4  ;;  %v4274_v28 = vrot.slane %v3687_v12, 2  ;;  %v517_v12 = vadd.s32 72, %v3450_v8 }
 0x314   :  { %v3790_v18 = vsel %vm4236_vm15, %v2163_v57, %v3017_v45  ;;  %v2902_v30 = vunpack.i.l.bf16 %v3452_v14  ;;  %v3827_v14 = vadd.s32 88, %v3450_v8  ;;  %vm4283_vm15 = vcmask 293888  }
 0x315   :  { %4273 = vst [vmem:[#allocation31_spill] sm:$0xff] %v3790_v18  ;;  %v3794_v51 = vpop.permute.xlu1 %3009  ;;  %v3799_v13 = vsel %vm198_vm11, %v4274_v28, %v499_v34  ;;  %v3808_v45 = vsel %vm193_vm10, %v499_v34, %v502_v11  ;;  %v3821_v34 = vadd.s32 80, %v3450_v8  ;;  %vm532_vm10 = vcmp.lt.s32.totalorder %v3450_v8, 6 }
 0x316   :  { %v1043_v38 = vsel %vm1007_vm12, %v3799_v13, 0.0  ;;  %v995_v57 = vsel %vm971_vm13, %v3799_v13, 0.0  ;;  %v1044_v54 = vsel %vm1020_vm6, %v3808_v45, 0.0  ;;  %vm1117_vm11 = vcmp.lt.s32.totalorder %v517_v12, 78 }
 0x317   :  { %1746 = vrot.lane.b32.xlu0 %v1043_v38, %s3094_s18  ;;  %1698 = vrot.lane.b32.xlu1 %v995_v57, %s3092_s16  ;;  %v2917_v38 = vunpack.i.h.bf16 %v3541_v24  ;;  %v4275_v57 = vld [vmem:[#allocation21_spill] sm:$0xff]  ;;  %v556_v24 = vsel %vm532_vm10, %v3647_v19, 0.0  ;;  %vm1202_vm14 = vcmp.ge.s32.totalorder %v3821_v34, 84  ;;  %vm1153_vm12 = vcmp.ge.s32.totalorder %v517_v12, 78 }
 0x318   :  { %v2937_v28 = vunpack.i.h.bf16 %v4275_v57  ;;  %v1141_v49 = vsel %vm1117_vm11, %v3698_v31, 0.0  ;;  %v1092_v11 = vsel %vm1056_vm7, %v3808_v45, 0.0  ;;  %vm1251_vm13 = vcmp.ge.s32.totalorder %v3827_v14, 90  ;;  %vm4289_vm7 = vmmov %vm4283_vm15 }
 0x319   :  { %v3818_v21 = vpop.permute.xlu1 %3019  ;;  %v4278_v8 = vunpack.i.l.bf16 %v3295_v22  ;;  %vm1166_vm6 = vcmp.lt.s32.totalorder %v3821_v34, 84  ;;  %vm4280_vm11 = vcmask 244736   ;;  %v4281_v22 = vld [vmem:[#allocation27_spill] sm:$0xff]  ;;  %vm4286_vm8 = vcmask 343040  }
 0x31a   :  { %vm4285_vm10 = vmmov %vm4280_vm11  ;;  %v4292_v12 = vunpack.i.h.bf16 %v3337_v44  ;;  %v4298_v34 = vunpack.i.h.bf16 %v3359_v61 }
 0x31b   :  { %v1451_v15 = vpop.permute.xlu0 %1450  ;;  %3024 = vrot.lane.b32.xlu0 %v4258_v10, %s3099_s23  ;;  %1748 = vrot.lane.b32.xlu1 %v1044_v54, %s3094_s18 }
 0x31c   :  { %v2051_v57 = vsel %vm2047_vm4, %v3748_v36, %v1451_v15  ;;  %v2992_v15 = vunpack.i.h.bf16 %v4281_v22 }
 0x31d   :  { %v1301_v18 = vpop.permute.xlu1 %1300 }
 0x31e   :  { %v2009_v54 = vsel %vm2008_vm1, %v556_v24, %v1301_v18  ;;  %v2966_v18 = vunpack.i.l.bf16 %v3678_v63  ;;  %v4279_v24 = vunpack.i.l.bf16 %v3299_v25 }
 0x31f   :  { %v2022_v17 = vsel %vm2021_vm2, %v2009_v54, %v4278_v8  ;;  %v1499_v19 = vpop.permute.xlu0 %1498  ;;  %1846 = vrot.lane.b32.xlu0 %v1141_v49, %s3096_s2  ;;  %1796 = vrot.lane.b32.xlu1 %v1092_v11, %s3095_s19  ;;  %v2986_v8 = vunpack.i.l.bf16 %v3734_v16  ;;  %v4282_v54 = vunpack.i.l.bf16 %v3313_v32  ;;  %v4287_v16 = vld [vmem:[#allocation29_spill] sm:$0xff] }
 0x320   :  { %v2035_v23 = vsel %vm2034_vm3, %v2022_v17, %v4279_v24  ;;  %v2064_v36 = vsel %vm4280_vm11, %v2051_v57, %v1499_v19  ;;  %v1238_v17 = vsel %vm1202_vm14, %v3799_v13, 0.0  ;;  %v1189_v57 = vsel %vm1153_vm12, %v3698_v31, 0.0 }
 0x321   :  { %v2048_v11 = vsel %vm2047_vm4, %v2035_v23, %v4282_v54  ;;  %v2077_v49 = vsel %vm4283_vm15, %v2064_v36, %v2902_v30  ;;  %vm2190_vm11 = vcmask 736256   ;;  %v3007_v19 = vunpack.i.h.bf16 %v4287_v16 }
 0x322   :  { %v2061_v63 = vsel %vm4285_vm10, %v2048_v11, %v4284_v46  ;;  %v2090_v43 = vsel %vm4286_vm8, %v2077_v49, %v2917_v38  ;;  %v4288_v23 = vunpack.i.l.bf16 %v3352_v55  ;;  %vm4290_vm15 = vcmask 392192   ;;  %v4291_v38 = vld [vmem:[#allocation26_spill] sm:$0xff]  ;;  %v4294_v11 = vld [vmem:[#allocation28_spill] sm:$0xff] }
 0x323   :  { %v2103_v24 = vsel %vm4290_vm15, %v2090_v43, %v2937_v28  ;;  %1944 = vrot.lane.b32.xlu0 %v1238_v17, %s3098_s22  ;;  %1894 = vrot.lane.b32.xlu1 %v1189_v57, %s3097_s21  ;;  %vm2203_vm8 = vcmask 785408   ;;  %v2981_v22 = vunpack.i.l.bf16 %v4291_v38  ;;  %v3016_v31 = vunpack.i.l.bf16 %v3761_v41  ;;  %vm4296_vm12 = vmmov %vm4290_vm15 }
 0x324   :  { %v2074_v30 = vsel %vm4289_vm7, %v2061_v63, %v4288_v23  ;;  %v1303_v36 = vpop.permute.xlu0 %1302  ;;  %v1353_v46 = vpop.permute.xlu1 %1352  ;;  %vm4293_vm14 = vcmask 343040   ;;  %v2116_v55 = vsel %vm2112_vm9, %v2103_v24, %v2966_v18  ;;  %v3001_v49 = vunpack.i.l.bf16 %v4294_v11 }
 0x325   :  { %v2087_v54 = vsel %vm4293_vm14, %v2074_v30, %v4292_v12  ;;  %v3022_v43 = vunpack.i.h.bf16 %v3818_v21  ;;  %v4295_v28 = vunpack.i.h.bf16 %v3343_v47  ;;  %v2129_v17 = vsel %vm2125_vm0, %v2116_v55, %v2986_v8 }
 0x326   :  { %v1287_v41 = vsel %vm1251_vm13, %v3808_v45, 0.0  ;;  %v1190_v57 = vsel %vm1166_vm6, %v3799_v13, 0.0  ;;  %v4297_v18 = vunpack.i.l.bf16 %v3407_v52  ;;  %v2142_v23 = vsel %vm2138_vm5, %v2129_v17, %v2992_v15 }
 0x327   :  { %v2100_v63 = vsel %vm4296_vm12, %v2087_v54, %v4295_v28  ;;  %v2010_v30 = vsel %vm2008_vm1, 0.0, %v1303_v36  ;;  %v2024_v24 = vsel %vm2021_vm2, %v3737_v20, %v1353_v46  ;;  %1994 = vrot.lane.b32.xlu0 %v1287_v41, %s3099_s23  ;;  %1896 = vrot.lane.b32.xlu1 %v1190_v57, %s3097_s21  ;;  %vm4299_vm13 = vcmask 588800  }
 0x328   :  { %v2113_v16 = vsel %vm2112_vm9, %v2100_v63, %v4297_v18  ;;  %v1351_v8 = vpop.permute.xlu0 %1350  ;;  %v1401_v12 = vpop.permute.xlu1 %1400  ;;  %v2155_v52 = vsel %vm4299_vm13, %v2142_v23, %v3007_v19  ;;  %v4300_v36 = vunpack.i.l.bf16 %v3578_v7  ;;  %vm4301_vm6 = vcmask 637952   ;;  %vm4305_vm10 = vmmov %vm4299_vm13 }
 0x329   :  { %v2126_v13 = vsel %vm2125_vm0, %v2113_v16, %v4298_v34  ;;  %v2023_v54 = vsel %vm2021_vm2, %v2010_v30, %v1351_v8  ;;  %v2037_v15 = vsel %vm2034_vm3, %v2024_v24, %v1401_v12  ;;  %v2168_v46 = vsel %vm4301_vm6, %v2155_v52, %v3016_v31  ;;  %vm4312_vm12 = vmmov %vm4301_vm6  ;;  %v4313_v24 = vld [vmem:[#allocation24_spill] sm:$0xff] }
 0x32a   :  { %v2139_v20 = vsel %vm2138_vm5, %v2126_v13, %v4300_v36  ;;  %v4302_v55 = vunpack.i.h.bf16 %v3299_v25  ;;  %v4303_v63 = vunpack.i.l.bf16 %v3315_v33  ;;  %v4304_v19 = vunpack.i.l.bf16 %v4276_v58 }
 0x32b   :  { %vm4306_vm7 = vcmask 687104   ;;  %v4307_v18 = vunpack.i.h.bf16 %v3313_v32  ;;  %v4308_v31 = vunpack.i.h.bf16 %v3349_v53  ;;  %vm4309_vm15 = vcmask 244736  }
 0x32c   :  { %v2036_v28 = vsel %vm2034_vm3, %v2023_v54, %v4302_v55  ;;  %v2050_v17 = vsel %vm2047_vm4, %v2037_v15, %v4303_v63  ;;  %v2152_v41 = vsel %vm4305_vm10, %v2139_v20, %v4304_v19  ;;  %v3928_v57 = vsel %vm4306_vm7, %v2168_v46, %v3022_v43  ;;  %vm4315_vm13 = vmmov %vm4309_vm15  ;;  %v1501_v34 = vpop.permute.xlu0 %1500  ;;  %v1551_v13 = vpop.permute.xlu1 %1550 }
 0x32d   :  { %v2049_v16 = vsel %vm2047_vm4, %v2036_v28, %v4307_v18  ;;  %v2063_v25 = vsel %vm4309_vm15, %v2050_v17, %v4308_v31  ;;  %vm4310_vm14 = vcmp.lt.s32.totalorder %v3827_v14, 90  ;;  %v4311_v23 = vunpack.i.l.bf16 %v4277_v4  ;;  %vm4318_vm10 = vmmov %vm4306_vm7  ;;  %v4319_v14 = vld [vmem:[#allocation25_spill] sm:$0xff] }
 0x32e   :  { %v1239_v33 = vsel %vm4310_vm14, %v3808_v45, 0.0  ;;  %v2971_v8 = vunpack.i.l.bf16 %v4313_v24  ;;  %v4314_v43 = vunpack.i.h.bf16 %v3345_v48  ;;  %v4316_v12 = vunpack.i.l.bf16 %v3436_v9 }
 0x32f   :  { %v2165_v30 = vsel %vm4312_vm12, %v2152_v41, %v4311_v23  ;;  %vm4317_vm6 = vcmask 293888   ;;  %1946 = vrot.lane.b32.xlu1 %v1239_v33, %s3098_s22  ;;  %v2977_v52 = vunpack.i.h.bf16 %v4319_v14  ;;  %v2976_v54 = vunpack.i.l.bf16 %v4319_v14 }
 0x330   :  { %v2062_v32 = vsel %vm4315_vm13, %v2049_v16, %v4314_v43  ;;  %v2076_v53 = vsel %vm4317_vm6, %v2063_v25, %v4316_v12  ;;  %v2178_v45 = vsel %vm4318_vm10, %v2165_v30, %v2981_v22  ;;  %v4320_v15 = vunpack.i.l.bf16 %v3369_v6  ;;  %vm4321_vm7 = vmmov %vm4317_vm6  ;;  %v1549_v16 = vpop.permute.xlu0 %1548 }
 0x331   :  { %v4322_v36 = vunpack.i.h.bf16 %v3386_v56  ;;  %vm4323_vm15 = vcmask 343040   ;;  %v2996_v20 = vunpack.i.l.bf16 %v3759_v60  ;;  %v4324_v46 = vunpack.i.h.bf16 %v3365_v2  ;;  %vm4333_vm10 = vmmov %vm4321_vm7 }
 0x332   :  { %v2075_v48 = vsel %vm4321_vm7, %v2062_v32, %v4320_v15  ;;  %vm4325_vm14 = vmmov %vm4323_vm15  ;;  %v4326_v22 = vunpack.i.h.bf16 %v3416_v62  ;;  %vm4327_vm12 = vcmask 392192   ;;  %v2191_v63 = vsel %vm2190_vm11, %v2178_v45, %v3001_v49 }
 0x333   :  { %v2089_v9 = vsel %vm4323_vm15, %v2076_v53, %v4322_v36  ;;  %v2088_v55 = vsel %vm4325_vm14, %v2075_v48, %v4324_v46  ;;  %v3011_v6 = vunpack.i.l.bf16 %v3794_v51  ;;  %v3021_v17 = vunpack.i.l.bf16 %v3818_v21  ;;  %vm4329_vm13 = vmmov %vm4327_vm12  ;;  %2570 = vmatprep.mubr.msk.f32.mxu0 %vm2203_vm8, %v2191_v63  ;;  %1978 = vrot.lane.b32.xlu1 %v4258_v10, %s3099_s23  ;;  %v4356_v63 = vld [vmem:[#allocation12_spill] sm:$0xff] }
 0x334   :  { %v2102_v28 = vsel %vm4327_vm12, %v2089_v9, %v4326_v22  ;;  %v4328_v56 = vunpack.i.h.bf16 %v3390_v59  ;;  %v4330_v41 = vunpack.i.l.bf16 %v3636_v29  ;;  %v4331_v62 = vunpack.i.l.bf16 %v3423_v1  ;;  %v1599_v59 = vpop.permute.xlu1 %1598  ;;  %vm4334_vm15 = vmmov %vm4325_vm14 }
 0x335   :  { %vm4332_vm6 = vcmask 244736   ;;  %v2079_v21 = vsel %vm4333_vm10, %v3764_v26, %v1551_v13  ;;  %v4335_v1 = vunpack.i.l.bf16 %v3535_v5  ;;  %v4337_v26 = vunpack.i.l.bf16 %v3319_v35 }
 0x336   :  { %v2101_v19 = vsel %vm4329_vm13, %v2088_v55, %v4328_v56  ;;  %v2115_v2 = vsel %vm2112_vm9, %v2102_v28, %v4330_v41  ;;  %v2065_v49 = vsel %vm4332_vm6, %v3754_v27, %v1501_v34  ;;  %v2092_v25 = vsel %vm4334_vm15, %v2079_v21, %v1599_v59  ;;  %vm4343_vm6 = vmmov %vm4327_vm12  ;;  %v4358_v41 = vld [vmem:[#allocation11_spill] sm:$0xff]  ;;  %v4365_v21 = vld [vmem:[#allocation14_spill] sm:$0xff] }
 0x337   :  { %v2114_v18 = vsel %vm2112_vm9, %v2101_v19, %v4331_v62  ;;  %v2128_v29 = vsel %vm2125_vm0, %v2115_v2, %v2971_v8  ;;  %v2078_v31 = vsel %vm4321_vm7, %v2065_v49, %v1549_v16  ;;  %v4336_v27 = vunpack.i.h.bf16 %v3555_v0 }
 0x338   :  { %v2127_v33 = vsel %vm2125_vm0, %v2114_v18, %v4335_v1  ;;  %v2091_v30 = vsel %vm4325_vm14, %v2078_v31, %v4337_v26  ;;  %v4338_v10 = vunpack.i.h.bf16 %v3323_v37  ;;  %v4339_v8 = vunpack.i.h.bf16 %v3578_v7 }
 0x339   :  { %v2141_v23 = vsel %vm2138_vm5, %v2128_v29, %v4336_v27  ;;  %v4340_v5 = vunpack.i.h.bf16 %v3580_v3  ;;  %vm4341_vm13 = vcmask 588800   ;;  %v4342_v0 = vunpack.i.l.bf16 %v3323_v37 }
 0x33a   :  { %v2105_v24 = vsel %vm4327_vm12, %v2092_v25, %v4338_v10  ;;  %v2140_v43 = vsel %vm2138_vm5, %v2127_v33, %v4339_v8  ;;  %v4344_v53 = vunpack.i.h.bf16 %v3327_v39  ;;  %v4345_v13 = vunpack.i.l.bf16 %v3580_v3  ;;  %vm4346_vm10 = vmmov %vm4341_vm13  ;;  %v4370_v10 = vld [vmem:[#allocation4_spill] sm:$0xff] }
 0x33b   :  { %v2154_v32 = vsel %vm4341_vm13, %v2141_v23, %v4340_v5  ;;  %v2104_v12 = vsel %vm4343_vm6, %v2091_v30, %v4342_v0  ;;  %vm4347_vm7 = vcmask 637952   ;;  %v4348_v14 = vunpack.i.l.bf16 %v3327_v39  ;;  %vm4360_vm13 = vmmov %vm4346_vm10  ;;  %v4369_v23 = vld [vmem:[#allocation3_spill] sm:$0xff] }
 0x33c   :  { %v2118_v34 = vsel %vm2112_vm9, %v2105_v24, %v4344_v53  ;;  %v2153_v45 = vsel %vm4346_vm10, %v2140_v43, %v4345_v13  ;;  %v2167_v7 = vsel %vm4347_vm7, %v2154_v32, %v2977_v52  ;;  %v4349_v48 = vunpack.i.h.bf16 %v3333_v42  ;;  %vm4350_vm15 = vmmov %vm4347_vm7  ;;  %v4353_v52 = vld [vmem:[#allocation10_spill] sm:$0xff]  ;;  %v4372_v0 = vld [vmem:[#allocation7_spill] sm:$0xff] }
 0x33d   :  { %v2117_v15 = vsel %vm2112_vm9, %v2104_v12, %v4348_v14  ;;  %v2166_v36 = vsel %vm4350_vm15, %v2153_v45, %v2976_v54  ;;  %vm4351_vm14 = vcmask 687104   ;;  %v2807_v46 = vunpack.i.l.bf16 %v3347_v50  ;;  %vm4362_vm6 = vmmov %vm4346_vm10  ;;  %v4371_v43 = vld [vmem:[#allocation6_spill] sm:$0xff] }
 0x33e   :  { %v2131_v37 = vsel %vm2125_vm0, %v2118_v34, %v4349_v48  ;;  %v4024_v9 = vsel %vm4351_vm14, %v2167_v7, %v3021_v17  ;;  %v4352_v3 = vunpack.i.l.bf16 %v3333_v42  ;;  %v4354_v22 = vunpack.i.h.bf16 %v4353_v52  ;;  %vm4355_vm12 = vmmov %vm4351_vm14  ;;  %v4373_v34 = vld [vmem:[#allocation9_spill] sm:$0xff] }
 0x33f   :  { %v2179_v28 = vsel %vm4355_vm12, %v2166_v36, %v2996_v20  ;;  %v2828_v56 = vunpack.i.h.bf16 %v4356_v63  ;;  %v4357_v54 = vunpack.i.l.bf16 %v4353_v52  ;;  %v4359_v2 = vunpack.i.h.bf16 %v4358_v41  ;;  %vm4364_vm10 = vmmov %vm4347_vm7 }
 0x340   :  { %v2130_v55 = vsel %vm2125_vm0, %v2117_v15, %v4352_v3  ;;  %v2144_v39 = vsel %vm2138_vm5, %v2131_v37, %v4354_v22  ;;  %v2192_v19 = vsel %vm2190_vm11, %v2179_v28, %v3011_v6  ;;  %v2827_v62 = vunpack.i.l.bf16 %v4356_v63  ;;  %vm4366_vm15 = vmmov %vm4355_vm12  ;;  %v4378_v3 = vld [vmem:[#allocation13_spill] sm:$0xff]  ;;  %v4379_v22 = vld [vmem:[#allocation15_spill] sm:$0xff] }
 0x341   :  { %v2143_v17 = vsel %vm2138_vm5, %v2130_v55, %v4357_v54  ;;  %v2157_v42 = vsel %vm4360_vm13, %v2144_v39, %v4359_v2  ;;  %2571 = vmatmul.mubr.msk.f32.vlgmr.msra.gmra.mrb[12].mxu0 %vm2203_vm8, %v2192_v19  ;;  %v4361_v18 = vunpack.i.l.bf16 %v4358_v41  ;;  %v4363_v49 = vunpack.i.h.bf16 %v3347_v50  ;;  %vm4367_vm14 = vmmov %vm4355_vm12  ;;  %v4368_v50 = vld [vmem:[#allocation2_spill] sm:$0xff]  ;;  %v4380_v63 = vld [vmem:[#allocation17_spill] sm:$0xff] }
 0x342   :  { %v2847_v16 = vunpack.i.l.bf16 %v4365_v21  ;;  %v2848_v31 = vunpack.i.h.bf16 %v4365_v21  ;;  %v2657_v27 = vunpack.i.l.bf16 %v4368_v50  ;;  %v2682_v26 = vunpack.i.l.bf16 %v4369_v23  ;;  %v4381_v19 = vld [vmem:[#allocation18_spill] sm:$0xff]  ;;  %v4383_v41 = vld [vmem:[#allocation20_spill] sm:$0xff] }
 0x343   :  { %v2156_v20 = vsel %vm4362_vm6, %v2143_v17, %v4361_v18  ;;  %v2170_v6 = vsel %vm4364_vm10, %v2157_v42, %v4363_v49  ;;  %v2708_v24 = vunpack.i.h.bf16 %v4370_v10  ;;  %v2733_v5 = vunpack.i.h.bf16 %v4371_v43 }
 0x344   :  { %v2169_v59 = vsel %vm4347_vm7, %v2156_v20, %v2807_v46  ;;  %v2183_v29 = vsel %vm4366_vm15, %v2170_v6, %v2828_v56  ;;  %v2015_v30 = vsel %vm2008_vm1, 0.0, %v2657_v27  ;;  %v2738_v12 = vunpack.i.h.bf16 %v4372_v0  ;;  %v4385_v6 = vld [vmem:[#allocation5_spill] sm:$0xff] }
 0x345   :  { %v2182_v25 = vsel %vm4367_vm14, %v2169_v59, %v2827_v62  ;;  %v2196_v33 = vsel %vm2190_vm11, %v2183_v29, %v2848_v31  ;;  %v2028_v8 = vsel %vm2021_vm2, %v2015_v30, %v2682_v26  ;;  %v2767_v13 = vunpack.i.l.bf16 %v4373_v34  ;;  %v4386_v59 = vld [vmem:[#allocation8_spill] sm:$0xff] }
 0x346   :  { %v2195_v1 = vsel %vm2190_vm11, %v2182_v25, %v2847_v16  ;;  %v2041_v32 = vsel %vm2034_vm3, %v2028_v8, %v2708_v24  ;;  %vm4374_vm12 = vcmask 244736   ;;  %v2743_v7 = vunpack.i.h.bf16 %v3319_v35 }
 0x347   :  { %2576 = vmatprep.mubr.msk.f32.mxu1 %vm2203_vm8, %v2195_v1  ;;  %v2054_v53 = vsel %vm2047_vm4, %v2041_v32, %v2733_v5  ;;  %vm4375_vm13 = vcmask 293888   ;;  %vm4376_vm6 = vcmask 343040   ;;  %v2822_v36 = vunpack.i.l.bf16 %v3359_v61 }
 0x348   :  { %2577 = vmatmul.mubr.msk.f32.vlgmr.msra.gmra.mrb[0].mxu1 %vm2203_vm8, %v2196_v33  ;;  %v2067_v45 = vsel %vm4374_vm12, %v2054_v53, %v2738_v12  ;;  %vm4377_vm10 = vcmask 392192   ;;  %v2842_v55 = vunpack.i.l.bf16 %v4378_v3  ;;  %v2862_v39 = vunpack.i.l.bf16 %v4379_v22 }
 0x349   :  { %v2080_v14 = vsel %vm4375_vm13, %v2067_v45, %v2767_v13  ;;  %v2882_v35 = vunpack.i.l.bf16 %v4380_v63  ;;  %v2897_v54 = vunpack.i.l.bf16 %v4381_v19  ;;  %vm4382_vm7 = vcmask 588800  }
 0x34a   :  { %v2093_v15 = vsel %vm4376_vm6, %v2080_v14, %v2743_v7  ;;  %v2931_v61 = vunpack.i.l.bf16 %v4383_v41  ;;  %vm4384_vm15 = vcmask 637952   ;;  %v2658_v18 = vunpack.i.h.bf16 %v4368_v50 }
 0x34b   :  { %v2683_v20 = vunpack.i.h.bf16 %v4369_v23  ;;  %v2712_v21 = vunpack.i.l.bf16 %v4385_v6  ;;  %v2752_v29 = vunpack.i.l.bf16 %v4386_v59  ;;  %v2762_v25 = vunpack.i.l.bf16 %v3329_v40  ;;  %v4403_v6 = vld [vmem:[#allocation31_spill] sm:$0xff] }
 0x34c   :  { %v2016_v49 = vsel %vm2008_vm1, 0.0, %v2658_v18  ;;  %v2768_v33 = vunpack.i.h.bf16 %v4373_v34  ;;  %v2782_v27 = vunpack.i.l.bf16 %v3337_v44  ;;  %v2802_v26 = vunpack.i.l.bf16 %v3343_v47  ;;  %vm4387_vm1 = vmmov %vm4376_vm6 }
 0x34d   :  { %v2029_v16 = vsel %vm2021_vm2, %v2016_v49, %v2683_v20  ;;  %vm4388_vm2 = vmmov %vm4377_vm10  ;;  %v2843_v40 = vunpack.i.h.bf16 %v4378_v3  ;;  %v2863_v5 = vunpack.i.h.bf16 %v4379_v22  ;;  %v2883_v44 = vunpack.i.h.bf16 %v4380_v63 }
 0x34e   :  { %v2042_v31 = vsel %vm2034_vm3, %v2029_v16, %v2712_v21  ;;  %v2898_v47 = vunpack.i.h.bf16 %v4381_v19  ;;  %vm4389_vm3 = vmmov %vm4382_vm7  ;;  %v2932_v13 = vunpack.i.h.bf16 %v4383_v41  ;;  %v2997_v63 = vunpack.i.h.bf16 %v3759_v60 }
 0x34f   :  { %v2055_v1 = vsel %vm2047_vm4, %v2042_v31, %v2752_v29  ;;  %vm4390_vm4 = vmmov %vm4384_vm15 }
 0x350   :  { %v2068_v50 = vsel %vm4374_vm12, %v2055_v1, %v2762_v25  ;;  %vm4393_vm6 = vmmov %vm4389_vm3 }
 0x351   :  { %v2081_v23 = vsel %vm4375_vm13, %v2068_v50, %v2768_v33 }
 0x352   :  { %v2094_v30 = vsel %vm4387_vm1, %v2081_v23, %v2782_v27  ;;  %vm4405_vm1 = vcmask 64512  }
 0x353   :  { %v2107_v24 = vsel %vm4388_vm2, %v2094_v30, %v2802_v26  ;;  %vm4406_vm2 = vmmov %vm4405_vm1 }
 0x364   :  { %v1649_v48 = vpop.permute.xlu0 %1648  ;;  %v1697_v37 = vpop.permute.xlu1 %1696 }
 0x365   :  { %v2106_v46 = vsel %vm4377_vm10, %v2093_v15, %v1649_v48  ;;  %vm4394_vm10 = vmmov %vm4390_vm4 }
 0x366   :  { %v2119_v52 = vsel %vm2112_vm9, %v2106_v46, %v1697_v37  ;;  %v2947_v37 = vunpack.i.h.bf16 %v4276_v58 }
 0x367   :  { %v2132_v28 = vsel %vm2125_vm0, %v2119_v52, %v2822_v36  ;;  %v4392_v36 = vld [vmem:[#allocation16_spill] sm:$0xff] }
 0x368   :  { %v2145_v56 = vsel %vm2138_vm5, %v2132_v28, %v2842_v55  ;;  %v2962_v55 = vunpack.i.h.bf16 %v4277_v4  ;;  %v3012_v4 = vunpack.i.h.bf16 %v3794_v51 }
 0x369   :  { %v2158_v17 = vsel %vm4382_vm7, %v2145_v56, %v2862_v39  ;;  %v2982_v39 = vunpack.i.h.bf16 %v4291_v38 }
 0x36a   :  { %v2171_v2 = vsel %vm4384_vm15, %v2158_v17, %v2882_v35  ;;  %v4395_v35 = vld [vmem:[#allocation19_spill] sm:$0xff]  ;;  %vm4398_vm15 = vmmov %vm4390_vm4 }
 0x36b   :  { %v2184_v42 = vsel %vm4367_vm14, %v2171_v2, %v2897_v54 }
 0x36c   :  { %v2197_v62 = vsel %vm2190_vm11, %v2184_v42, %v2931_v61  ;;  %v4400_v42 = vld [vmem:[#allocation30_spill] sm:$0xff] }
 0x36d   :  { %2579 = vmatprep.mubr.msk.f32.mxu1 %vm2203_vm8, %v2197_v62 }
 0x389   :  { %v1747_v10 = vpop.permute.xlu0 %1746  ;;  %v1699_v8 = vpop.permute.xlu1 %1698 }
 0x38a   :  { %v2120_v43 = vsel %vm2112_vm9, %v2107_v24, %v1699_v8  ;;  %vm4391_vm9 = vmmov %vm4367_vm14 }
 0x38b   :  { %v2133_v32 = vsel %vm2125_vm0, %v2120_v43, %v1747_v10  ;;  %vm4397_vm7 = vmmov %vm4391_vm9 }
 0x38c   :  { %v2146_v0 = vsel %vm2138_vm5, %v2133_v32, %v2843_v40  ;;  %vm4401_vm14 = vmmov %vm4390_vm4 }
 0x38d   :  { %v2159_v12 = vsel %vm4389_vm3, %v2146_v0, %v2863_v5  ;;  %v3025_v53 = vpop.permute.xlu0 %3024  ;;  %v1749_v34 = vpop.permute.xlu1 %1748 }
 0x38e   :  { %v3026_v45 = vunpack.i.l.bf16 %v3025_v53  ;;  %v2172_v7 = vsel %vm4390_vm4, %v2159_v12, %v2883_v44  ;;  %v2134_v46 = vsel %vm2125_vm0, %v4392_v36, %v1749_v34  ;;  %vm4396_vm0 = vmmov %vm4389_vm3  ;;  %v3027_v2 = vunpack.i.h.bf16 %v3025_v53 }
 0x38f   :  { %v2185_v14 = vsel %vm4391_vm9, %v2172_v7, %v2898_v47  ;;  %vm4407_vm9 = vmmov %vm4405_vm1 }
 0x390   :  { %v2198_v15 = vsel %vm2190_vm11, %v2185_v14, %v2932_v13  ;;  %v2193_v48 = vsel %vm2190_vm11, %v4024_v9, %v3026_v45  ;;  %v3002_v9 = vunpack.i.h.bf16 %v4294_v11 }
 0x391   :  { %2580 = vmatmul.mubr.msk.f32.gmra.mrb[2].mxu1 %vm2203_vm8, %v2198_v15  ;;  %v1797_v3 = vpop.permute.xlu1 %1796  ;;  %2573 = vmatprep.mubr.msk.f32.mxu0 %vm2203_vm8, %v2193_v48  ;;  %v1847_v52 = vpop.permute.xlu0 %1846 }
 0x392   :  { %v2147_v22 = vsel %vm2138_vm5, %v2134_v46, %v1797_v3  ;;  %v2161_v56 = vsel %vm4396_vm0, %v4395_v35, %v1847_v52  ;;  %vm4399_vm5 = vmmov %vm4397_vm7 }
 0x393   :  { %v2160_v28 = vsel %vm4393_vm6, %v2147_v22, %v2947_v37  ;;  %vm4402_vm12 = vmmov %vm4399_vm5 }
 0x394   :  { %v2173_v58 = vsel %vm4394_vm10, %v2160_v28, %v2962_v55  ;;  %vm4404_vm13 = vmmov %vm4399_vm5 }
 0x395   :  { %v1895_v19 = vpop.permute.xlu1 %1894  ;;  %v2186_v54 = vsel %vm4397_vm7, %v2173_v58, %v2982_v39  ;;  %v1945_v11 = vpop.permute.xlu0 %1944  ;;  %vm4408_vm6 = vmmov %vm4405_vm1 }
 0x396   :  { %v2174_v17 = vsel %vm4398_vm15, %v2161_v56, %v1895_v19  ;;  %v2199_v38 = vsel %vm2190_vm11, %v2186_v54, %v3002_v9  ;;  %vm4409_vm7 = vmmov %vm4405_vm1 }
 0x397   :  { %v2187_v41 = vsel %vm4399_vm5, %v2174_v17, %v2997_v63  ;;  %2582 = vmatprep.mubr.msk.f32.mxu1 %vm2203_vm8, %v2199_v38  ;;  %vm4410_vm15 = vmmov %vm4405_vm1 }
 0x398   :  { %v2200_v61 = vsel %vm2190_vm11, %v2187_v41, %v3012_v4 }
 0x399   :  { %v1897_v60 = vpop.permute.xlu1 %1896  ;;  %2583 = vmatmul.mubr.msk.f32.gmra.mrb[4].mxu1 %vm2203_vm8, %v2200_v61  ;;  %v1995_v49 = vpop.permute.xlu0 %1994 }
 0x39a   :  { %v2175_v62 = vsel %vm4401_vm14, %v4400_v42, %v1897_v60 }
 0x39b   :  { %v2188_v51 = vsel %vm4402_vm12, %v2175_v62, %v1945_v11  ;;  %vm4411_vm12 = vmmov %vm4405_vm1 }
 0x39c   :  { %v2201_v18 = vsel %vm2190_vm11, %v2188_v51, %v3027_v2 }
 0x39d   :  { %2585 = vmatprep.mubr.msk.f32.mxu1 %vm2203_vm8, %v2201_v18 }
 0x3a1   :  { %v1947_v20 = vpop.permute.xlu1 %1946 }
 0x3a2   :  { %v2189_v21 = vsel %vm4404_vm13, %v4403_v6, %v1947_v20  ;;  %vm4412_vm13 = vmmov %vm4405_vm1 }
 0x3a3   :  { %v2202_v16 = vsel %vm2190_vm11, %v2189_v21, %v1995_v49 }
 0x3a4   :  { %2586 = vmatmul.mubr.msk.f32.gmra.mrb[6].mxu1 %vm2203_vm8, %v2202_v16 }
 0x3a5   :  { %v1979_v59 = vpop.permute.xlu1 %1978 }
 0x3a6   :  { %v2194_v29 = vsel %vm2190_vm11, %v3928_v57, %v1979_v59 }
 0x3a7   :  { %2574 = vmatmul.mubr.msk.f32.gmra.mrb[14].mxu0 %vm2203_vm8, %v2194_v29 }
 0x414   :  { %v2572_v31 = vpop.f32.mrb[12].mxu0 }
 0x415   :  { %v2378_v25 = vmin.f32 %v2572_v31, 0.0  ;;  %v2306_v1 = vpop.f32.mrb[13].mxu0  ;;  %vm2366_vm11 = vcmp.gt.f32.partialorder %v2572_v31, 0.0 }
 0x416   :  { %v2377_v33 = vmin.f32 %v2306_v1, 0.0  ;;  %vm2365_vm8 = vcmp.gt.f32.partialorder %v2306_v1, 0.0 }
 0x417   :  { %v2391_v50 = vmul.f32 1.442695, %v2378_v25 }
 0x418   :  { %v2389_v27 = vmul.f32 1.442695, %v2377_v33 }
 0x419   :  { %3060 = vpow2.f32 %v2391_v50 }
 0x41a   :  { %3062 = vpow2.f32 %v2389_v27 }
 0x41b   :  { %v2578_v23 = vpop.f32.mrb[0].mxu1 }
 0x41c   :  { %v2382_v26 = vmin.f32 %v2578_v23, 0.0  ;;  %v2326_v30 = vpop.f32.mrb[1].mxu1  ;;  %vm2370_vm3 = vcmp.gt.f32.partialorder %v2578_v23, 0.0 }
 0x41d   :  { %v2381_v10 = vmin.f32 %v2326_v30, 0.0  ;;  %vm2369_vm4 = vcmp.gt.f32.partialorder %v2326_v30, 0.0 }
 0x41e   :  { %v2399_v24 = vmul.f32 1.442695, %v2382_v26 }
 0x41f   :  { %v2397_v8 = vmul.f32 1.442695, %v2381_v10 }
 0x420   :  { %3064 = vpow2.f32 %v2399_v24 }
 0x421   :  { %3066 = vpow2.f32 %v2397_v8 }
 0x423   :  { %v3061_v40 = vpop.eup %3060 }
 0x424   :  { %v3063_v57 = vpop.eup %3062  ;;  %v2478_v43 = vadd.f32 -1.0, %v3061_v40 }
 0x425   :  { %v2477_v5 = vadd.f32 -1.0, %v3063_v57 }
 0x426   :  { %v2426_v32 = vsel %vm2366_vm11, %v2572_v31, %v2478_v43 }
 0x427   :  { %2438 = vst.msk [vmem:[%s4203_s3 + $0x8] sm:$0xff] %vm4405_vm1, %v2426_v32  ;;  %v2425_v44 = vsel %vm2365_vm8, %v2306_v1, %v2477_v5 }
 0x428   :  { %2437 = vst.msk [vmem:[%s4203_s3] sm:$0xff] %vm4406_vm2, %v2425_v44  ;;  %vm4413_vm2 = vmmov %vm4405_vm1 }
 0x42a   :  { %v3065_v0 = vpop.eup %3064 }
 0x42b   :  { %v3067_v47 = vpop.eup %3066  ;;  %v2482_v12 = vadd.f32 -1.0, %v3065_v0 }
 0x42c   :  { %v2481_v53 = vadd.f32 -1.0, %v3067_v47 }
 0x42d   :  { %v2430_v34 = vsel %vm2370_vm3, %v2578_v23, %v2482_v12 }
 0x42e   :  { %2442 = vst.msk [vmem:[%s4203_s3 + $0x28] sm:$0xff] %vm4407_vm9, %v2430_v34  ;;  %v2429_v13 = vsel %vm2369_vm4, %v2326_v30, %v2481_v53  ;;  %vm4414_vm9 = vmmov %vm4405_vm1 }
 0x42f   :  { %2441 = vst.msk [vmem:[%s4203_s3 + $0x20] sm:$0xff] %vm4408_vm6, %v2429_v13  ;;  %vm4415_vm6 = vmmov %vm4405_vm1 }
 0x464   :  { %v2581_v45 = vpop.f32.mrb[2].mxu1 }
 0x465   :  { %v2384_v7 = vmin.f32 %v2581_v45, 0.0  ;;  %v2336_v14 = vpop.f32.mrb[3].mxu1  ;;  %vm2372_vm10 = vcmp.gt.f32.partialorder %v2581_v45, 0.0 }
 0x466   :  { %v2383_v15 = vmin.f32 %v2336_v14, 0.0  ;;  %vm2371_vm0 = vcmp.gt.f32.partialorder %v2336_v14, 0.0 }
 0x467   :  { %v2403_v48 = vmul.f32 1.442695, %v2384_v7 }
 0x468   :  { %v2401_v37 = vmul.f32 1.442695, %v2383_v15 }
 0x469   :  { %3068 = vpow2.f32 %v2403_v48 }
 0x46a   :  { %3070 = vpow2.f32 %v2401_v37 }
 0x46c   :  { %v2584_v36 = vpop.f32.mrb[4].mxu1 }
 0x46d   :  { %v2386_v46 = vmin.f32 %v2584_v36, 0.0  ;;  %v2346_v3 = vpop.f32.mrb[5].mxu1  ;;  %vm2374_vm5 = vcmp.gt.f32.partialorder %v2584_v36, 0.0 }
 0x46e   :  { %v2385_v55 = vmin.f32 %v2346_v3, 0.0  ;;  %vm2373_vm14 = vcmp.gt.f32.partialorder %v2346_v3, 0.0 }
 0x46f   :  { %v2407_v52 = vmul.f32 1.442695, %v2386_v46 }
 0x470   :  { %v2405_v22 = vmul.f32 1.442695, %v2385_v55 }
 0x471   :  { %3072 = vpow2.f32 %v2407_v52 }
 0x472   :  { %3074 = vpow2.f32 %v2405_v22 }
 0x473   :  { %v3069_v39 = vpop.eup %3068 }
 0x474   :  { %v3071_v9 = vpop.eup %3070  ;;  %v2484_v58 = vadd.f32 -1.0, %v3069_v39 }
 0x475   :  { %v2483_v56 = vadd.f32 -1.0, %v3071_v9 }
 0x476   :  { %v2432_v54 = vsel %vm2372_vm10, %v2581_v45, %v2484_v58 }
 0x477   :  { %v2587_v28 = vpop.f32.mrb[6].mxu1  ;;  %2444 = vst.msk [vmem:[%s4203_s3 + $0x38] sm:$0xff] %vm4409_vm7, %v2432_v54  ;;  %v2431_v38 = vsel %vm2371_vm0, %v2336_v14, %v2483_v56 }
 0x478   :  { %v2388_v63 = vmin.f32 %v2587_v28, 0.0  ;;  %v2356_v35 = vpop.f32.mrb[7].mxu1  ;;  %2443 = vst.msk [vmem:[%s4203_s3 + $0x30] sm:$0xff] %vm4410_vm15, %v2431_v38  ;;  %vm2376_vm11 = vcmp.gt.f32.partialorder %v2587_v28, 0.0 }
 0x479   :  { %v2387_v19 = vmin.f32 %v2356_v35, 0.0  ;;  %vm2375_vm8 = vcmp.gt.f32.partialorder %v2356_v35, 0.0 }
 0x47a   :  { %v2411_v4 = vmul.f32 1.442695, %v2388_v63  ;;  %v2575_v17 = vpop.f32.mrb[14].mxu0 }
 0x47b   :  { %v2409_v41 = vmul.f32 1.442695, %v2387_v19  ;;  %v2380_v11 = vmin.f32 %v2575_v17, 0.0  ;;  %v2316_v61 = vpop.f32.mrb[15].mxu0  ;;  %v3073_v62 = vpop.eup %3072  ;;  %vm2368_vm3 = vcmp.gt.f32.partialorder %v2575_v17, 0.0 }
 0x47c   :  { %3076 = vpow2.f32 %v2411_v4  ;;  %v2379_v60 = vmin.f32 %v2316_v61, 0.0  ;;  %v3075_v51 = vpop.eup %3074  ;;  %v2486_v18 = vadd.f32 -1.0, %v3073_v62  ;;  %vm2367_vm4 = vcmp.gt.f32.partialorder %v2316_v61, 0.0 }
 0x47d   :  { %3078 = vpow2.f32 %v2409_v41  ;;  %v2395_v2 = vmul.f32 1.442695, %v2380_v11  ;;  %v2485_v20 = vadd.f32 -1.0, %v3075_v51 }
 0x47e   :  { %v2393_v42 = vmul.f32 1.442695, %v2379_v60  ;;  %v2434_v49 = vsel %vm2374_vm5, %v2584_v36, %v2486_v18 }
 0x47f   :  { %3080 = vpow2.f32 %v2395_v2  ;;  %2446 = vst.msk [vmem:[%s4203_s3 + $0x48] sm:$0xff] %vm4411_vm12, %v2434_v49  ;;  %v2433_v6 = vsel %vm2373_vm14, %v2346_v3, %v2485_v20 }
 0x480   :  { %3082 = vpow2.f32 %v2393_v42  ;;  %2445 = vst.msk [vmem:[%s4203_s3 + $0x40] sm:$0xff] %vm4412_vm13, %v2433_v6 }
 0x486   :  { %v3077_v21 = vpop.eup %3076 }
 0x487   :  { %v3079_v16 = vpop.eup %3078  ;;  %v2488_v59 = vadd.f32 -1.0, %v3077_v21 }
 0x488   :  { %v2487_v29 = vadd.f32 -1.0, %v3079_v16 }
 0x489   :  { %v3081_v31 = vpop.eup %3080  ;;  %v2436_v25 = vsel %vm2376_vm11, %v2587_v28, %v2488_v59 }
 0x48a   :  { %v3083_v1 = vpop.eup %3082  ;;  %2448 = vst.msk [vmem:[%s4203_s3 + $0x58] sm:$0xff] %vm4405_vm1, %v2436_v25  ;;  %v2435_v33 = vsel %vm2375_vm8, %v2356_v35, %v2487_v29  ;;  %v2480_v50 = vadd.f32 -1.0, %v3081_v31 }
 0x48b   :  { %2447 = vst.msk [vmem:[%s4203_s3 + $0x50] sm:$0xff] %vm4413_vm2, %v2435_v33  ;;  %v2479_v27 = vadd.f32 -1.0, %v3083_v1 }
 0x48c   :  { %v2428_v23 = vsel %vm2368_vm3, %v2575_v17, %v2480_v50 }
 0x48d   :  { %2440 = vst.msk [vmem:[%s4203_s3 + $0x18] sm:$0xff] %vm4414_vm9, %v2428_v23  ;;  %v2427_v26 = vsel %vm2367_vm4, %v2316_v61, %v2479_v27 }
 0x48e   :  { %2439 = vst.msk [vmem:[%s4203_s3 + $0x10] sm:$0xff] %vm4415_vm6, %v2427_v26 }

</bundles_post_ra>
